<compile_context>
chip_gen: v7x
topology: tpu7x:2x2x1
jax: 0.10.0
libtpu: 0.0.40
codegen_flags: <defaults>
</compile_context>

<pallas_src>
import jax
import jax.numpy as jnp
from jax.experimental import pallas as pl
from jax.experimental.pallas import tpu as pltpu


def _topo_decoder_kernel_fused_gather(xt_ref, eidx_ref,
                                      w1t_ref, b1_ref, w2t_ref, b2_ref, o_ref):
    """In-kernel gather path: x^T resident in VMEM, one-hot gather on the MXU."""
    xt = xt_ref[...]                                   # [d_in, n_nodes] (resident)
    n_nodes = xt.shape[1]
    tile_e = eidx_ref.shape[1]

    # Single fused one-hot gather for both edge endpoints:
    #   idx_both = [src | dst] indices, sel[n, c] = (n == idx_both[c]),
    #   x_gathered = x^T @ sel  (exact selection -> stays f32 on the MXU).
    idx_both = jnp.concatenate([eidx_ref[0:1, :], eidx_ref[1:2, :]], axis=1)
    node_iota = jax.lax.broadcasted_iota(jnp.int32, (n_nodes, 2 * tile_e), 0)
    sel = (node_iota == idx_both).astype(xt.dtype)               # [n_nodes, 2*tile_e]
    xg = jnp.dot(xt, sel, preferred_element_type=jnp.float32)    # [d_in, 2*tile_e]

    # TODO(synk): training-mode dropout (Bernoulli mask * 1/(1-p)) not implemented.
    h = xg[:, :tile_e] * xg[:, tile_e:]                          # [d_in, tile_e]

    # fc1 + ReLU   (lanes = edges, MXU N-dim = tile_e)
    h1 = jnp.dot(w1t_ref[...], h.astype(w1t_ref.dtype),
                 preferred_element_type=jnp.float32) + b1_ref[...]
    h1 = jnp.maximum(h1, 0.0)                                    # [d_lat, tile_e]

    # fc2
    out = jnp.dot(w2t_ref[...], h1.astype(w2t_ref.dtype),
                  preferred_element_type=jnp.float32) + b2_ref[...]
    o_ref[...] = out.astype(o_ref.dtype)                         # [d_out, tile_e]


def _topo_decoder_kernel_pregathered(xa_ref, xb_ref,
                                     w1t_ref, b1_ref, w2t_ref, b2_ref, o_ref):
    """Streaming fallback: edge features already gathered ([d_in, tile_e] tiles)."""
    # TODO(synk): training-mode dropout (Bernoulli mask * 1/(1-p)) not implemented.
    h = xa_ref[...] * xb_ref[...]                                # [d_in, tile_e]
    h1 = jnp.dot(w1t_ref[...], h.astype(w1t_ref.dtype),
                 preferred_element_type=jnp.float32) + b1_ref[...]
    h1 = jnp.maximum(h1, 0.0)
    out = jnp.dot(w2t_ref[...], h1.astype(w2t_ref.dtype),
                  preferred_element_type=jnp.float32) + b2_ref[...]
    o_ref[...] = out.astype(o_ref.dtype)


def _chip_info():
    """(physical VMEM bytes, tensorcores per chip) with conservative fallbacks."""
    vmem_cap = 64 << 20            # conservative fallback (v7x per-TC VMEM)
    num_tc = 1
    try:
        info = pltpu.get_tpu_info()
        vmem_cap = int(getattr(info, "vmem_capacity_bytes", vmem_cap))
    except Exception:
        pass
    try:
        kind = jax.devices()[0].device_kind.lower()
        if ("v4" in kind) or ("v7" in kind):      # megacore / dual-TC chips
            num_tc = 2
    except Exception:
        pass
    return vmem_cap, num_tc


def _round_tile(t, e):
    """Round a tile to a multiple of 128, at least 128, at most padded E."""
    e_pad_min = -(-int(e) // 128) * 128
    t = min(int(t), e_pad_min)
    return max(128, (t // 128) * 128)


def topology_decoder(x, edge_index, w1, b1, w2, b2, *, tile_e=None,
                     gather_in_kernel=None, max_fused_nodes=1024,
                     transposed_output=False):
    """TopologyDecoder forward.

    x: [N, d_in] f32, edge_index: [2, E] int, w1: [d_in, d_lat], w2: [d_lat, d_out]
    Returns [E, d_out] (or [d_out, E] if transposed_output=True):
        out = fc2(relu(fc1(x[e0] * x[e1]))).
    """
    n_nodes, d_in = x.shape
    d_lat = w1.shape[1]
    d_out = w2.shape[1]
    e = int(edge_index.shape[1])

    # --- chip-aware VMEM budget --------------------------------------------------
    vmem_cap, num_tc = _chip_info()
    # 48 MiB is comfortably <= 3/4 of the smallest physical VMEM (v7x 64 MiB) and
    # well above the 16/32 MiB scoped defaults on v5e/v6e/v7x.
    vmem_limit = min(int(vmem_cap * 3 // 4), 48 << 20)
    tile_budget = vmem_limit // 2            # headroom for compiler temps / params

    # --- path selection ----------------------------------------------------------
    if gather_in_kernel is None:
        xt_bytes = n_nodes * d_in * 4
        # Fused one-hot gather only while (a) x^T is small enough to sit in VMEM
        # and (b) the O(n_nodes * tile_e) one-hot VPU work stays cheap.
        gather_in_kernel = (n_nodes <= max_fused_nodes
                            and xt_bytes <= min(4 << 20, tile_budget // 4))

    # --- tile selection: big lane-dense tiles sized from the VMEM budget ----------
    if tile_e is None:
        if gather_in_kernel:
            # Dominant VMEM term: one-hot selector [n_nodes, 2*tile_e] f32
            # (comparison / gathered-feature temps are the same order).
            sel_budget = min(8 << 20, tile_budget // 3)
            tile_e = min(sel_budget // max(1, 8 * n_nodes), 4096)
        else:
            # Dominant: double-buffered xa/xb input tiles + output tile.
            per_edge_bytes = (4 * d_in + 2 * d_out) * 4
            tile_e = min(tile_budget // max(1, per_edge_bytes), 8192)
    tile_e = _round_tile(tile_e, e)

    # Only split work for multiple TensorCores (v4 / v7x).  On single-TC chips the
    # grid is a sequential loop, so extra steps are pure overhead.
    if num_tc > 1:
        while tile_e > 128 and -(-e // tile_e) < num_tc:
            tile_e -= 128
    e_pad = -(-e // tile_e) * tile_e
    grid = (e_pad // tile_e,)

    # --- transposed ("edges on lanes") parameter layout ---------------------------
    # bf16 weights only when the layers are big enough for the bf16 MXU gain to
    # matter (v6e/v7x); tiny layers (like this model's 32x64) stay exact f32.
    w_dtype = jnp.bfloat16 if (d_in >= 256 and d_lat >= 256) else jnp.float32
    w1t = w1.T.astype(w_dtype)                        # [d_lat, d_in]
    w2t = w2.T.astype(w_dtype)                        # [d_out, d_lat]
    b1c = b1.reshape(d_lat, 1).astype(jnp.float32)    # broadcast over lanes
    b2c = b2.reshape(d_out, 1).astype(jnp.float32)

    ei = edge_index.astype(jnp.int32)
    eidx = jnp.zeros((2, e_pad), jnp.int32).at[:, :e].set(ei)   # padded tail -> node 0

    param_specs = [
        pl.BlockSpec((d_lat, d_in), lambda i: (0, 0)),    # W1^T  (VMEM-resident)
        pl.BlockSpec((d_lat, 1), lambda i: (0, 0)),       # b1
        pl.BlockSpec((d_out, d_lat), lambda i: (0, 0)),   # W2^T
        pl.BlockSpec((d_out, 1), lambda i: (0, 0)),       # b2
    ]
    out_spec = pl.BlockSpec((d_out, tile_e), lambda i: (0, i))    # lane-dense store
    out_shape = jax.ShapeDtypeStruct((d_out, e_pad), jnp.float32)
    cparams = pltpu.CompilerParams(dimension_semantics=("parallel",),
                                   vmem_limit_bytes=vmem_limit)

    if gather_in_kernel:
        xt = x.T.astype(jnp.float32)                              # [d_in, n_nodes]
        out = pl.pallas_call(
            _topo_decoder_kernel_fused_gather,
            out_shape=out_shape,
            grid_spec=pltpu.PrefetchScalarGridSpec(
                num_scalar_prefetch=0,
                grid=grid,
                in_specs=[
                    pl.BlockSpec((d_in, n_nodes), lambda i: (0, 0)),  # x^T resident
                    pl.BlockSpec((2, tile_e), lambda i: (0, i)),      # edge idx tile
                    *param_specs,
                ],
                out_specs=out_spec,
            ),
            compiler_params=cparams,
        )(xt, eidx, w1t, b1c, w2t, b2c)
    else:
        # Large-N fallback: gather with XLA, stream edge features through big tiles.
        # TODO(synk): a manual DMA row-gather (x under pl.ANY + per-edge
        # make_async_copy into a double-buffered VMEM scratch) would remove the
        # xa/xb HBM round-trip, but with d_in-sized rows (~128-256 B) the per-edge
        # DMA descriptor overhead dominates, so the XLA gather is kept here.
        xt = x.T.astype(jnp.float32)
        xa = jnp.take(xt, eidx[0], axis=1)                        # [d_in, e_pad]
        xb = jnp.take(xt, eidx[1], axis=1)
        out = pl.pallas_call(
            _topo_decoder_kernel_pregathered,
            out_shape=out_shape,
            grid_spec=pltpu.PrefetchScalarGridSpec(
                num_scalar_prefetch=0,
                grid=grid,
                in_specs=[
                    pl.BlockSpec((d_in, tile_e), lambda i: (0, i)),
                    pl.BlockSpec((d_in, tile_e), lambda i: (0, i)),
                    *param_specs,
                ],
                out_specs=out_spec,
            ),
            compiler_params=cparams,
        )(xa, xb, w1t, b1c, w2t, b2c)

    if transposed_output:
        return out[:, :e]                                # [d_out, E], no HBM relayout
    return out[:, :e].T                                  # [E, d_out]


def _reference(x, edge_index, w1, b1, w2, b2):
    h = x[edge_index[0]] * x[edge_index[1]]
    h = jnp.maximum(h @ w1 + b1, 0.0)
    return h @ w2 + b2


if __name__ == "__main__":
    key = jax.random.PRNGKey(0)
    k_x, k_e0, k_e1, k_w1, k_b1, k_w2, k_b2 = jax.random.split(key, 7)

    N = 32            # number of nodes
    E = 2000          # number of edges (NOT a multiple of the tile -> exercises padding)
    D_IN = 32         # encoder latent_dim (TopologyDecoder input_dim)
    D_LAT = 64        # 2 * latent_dim (TopologyDecoder hidden)
    D_OUT = 1

    x = jax.random.normal(k_x, (N, D_IN), dtype=jnp.float32)
    edge_index = jnp.stack(
        [
            jax.random.randint(k_e0, (E,), 0, N, dtype=jnp.int32),
            jax.random.randint(k_e1, (E,), 0, N, dtype=jnp.int32),
        ],
        axis=0,
    )  # [2, E]

    w1 = jax.random.normal(k_w1, (D_IN, D_LAT), dtype=jnp.float32) * (1.0 / jnp.sqrt(D_IN))
    b1 = jax.random.normal(k_b1, (D_LAT,), dtype=jnp.float32) * 0.1
    w2 = jax.random.normal(k_w2, (D_LAT, D_OUT), dtype=jnp.float32) * (1.0 / jnp.sqrt(D_LAT))
    b2 = jax.random.normal(k_b2, (D_OUT,), dtype=jnp.float32) * 0.1

    ref = _reference(x, edge_index, w1, b1, w2, b2)

    # Fused in-kernel gather path (default for small node counts).
    out_fused = jax.block_until_ready(
        topology_decoder(x, edge_index, w1, b1, w2, b2))
    assert out_fused.shape == (E, D_OUT)
    assert jnp.allclose(out_fused, ref, atol=1e-4, rtol=1e-4), "fused-gather path mismatch"

    # Streaming fallback path (used for large node counts) — verify it too.
    out_stream = jax.block_until_ready(
        topology_decoder(x, edge_index, w1, b1, w2, b2, gather_in_kernel=False))
    assert out_stream.shape == (E, D_OUT)
    assert jnp.allclose(out_stream, ref, atol=1e-4, rtol=1e-4), "streaming path mismatch"

    print("KERNEL_OK")
</pallas_src>

<mosaic_0001>
module attributes {stable_mosaic.version = 11 : i64} {
  func.func @_topo_decoder_kernel_fused_gather(%arg0: i32, %arg1: memref<32x32xf32, #tpu.memory_space<vmem>>, %arg2: memref<2x2048xi32, #tpu.memory_space<vmem>>, %arg3: memref<64x32xf32, #tpu.memory_space<vmem>>, %arg4: memref<64x1xf32, #tpu.memory_space<vmem>>, %arg5: memref<1x64xf32, #tpu.memory_space<vmem>>, %arg6: memref<1x1xf32, #tpu.memory_space<vmem>>, %arg7: memref<1x2048xf32, #tpu.memory_space<vmem>>) attributes {dimension_semantics = [#tpu.dimension_semantics<parallel>], iteration_bounds = array<i64: 1>, scalar_prefetch = 0 : i64, scratch_operands = 0 : i64, tpu.core_type = #tpu.core_type<tc>, window_params = [{pipeline_mode = #tpu.pipeline_mode<synchronous>, transform_indices = @transform_0, window_bounds = array<i64: 32, 32>}, {transform_indices = @transform_1, window_bounds = array<i64: 2, 2048>}, {pipeline_mode = #tpu.pipeline_mode<synchronous>, transform_indices = @transform_2, window_bounds = array<i64: 64, 32>}, {pipeline_mode = #tpu.pipeline_mode<synchronous>, transform_indices = @transform_3, window_bounds = array<i64: 64, 1>}, {pipeline_mode = #tpu.pipeline_mode<synchronous>, transform_indices = @transform_4, window_bounds = array<i64: 1, 64>}, {pipeline_mode = #tpu.pipeline_mode<synchronous>, transform_indices = @transform_5, window_bounds = array<i64: 1, 1>}, {transform_indices = @transform_6, window_bounds = array<i64: 1, 2048>}]} {
    %c0 = arith.constant 0 : index
    %c0_0 = arith.constant 0 : index
    %0 = vector.load %arg1[%c0, %c0_0] : memref<32x32xf32, #tpu.memory_space<vmem>>, vector<32x32xf32>
    %c0_1 = arith.constant 0 : index
    %c0_2 = arith.constant 0 : index
    %1 = vector.load %arg2[%c0_1, %c0_2] : memref<2x2048xi32, #tpu.memory_space<vmem>>, vector<1x2048xi32>
    %c1 = arith.constant 1 : index
    %c0_3 = arith.constant 0 : index
    %2 = vector.load %arg2[%c1, %c0_3] : memref<2x2048xi32, #tpu.memory_space<vmem>>, vector<1x2048xi32>
    %3 = tpu.concatenate %1, %2 in 1 : vector<1x2048xi32>, vector<1x2048xi32> -> vector<1x4096xi32>
    %4 = tpu.iota {dimensions = array<i32: 0>} : vector<32x4096xi32>
    %5 = vector.broadcast %3 : vector<1x4096xi32> to vector<32x4096xi32>
    %6 = arith.cmpi eq, %4, %5 : vector<32x4096xi32>
    %7 = arith.extui %6 : vector<32x4096xi1> to vector<32x4096xi32>
    %8 = arith.sitofp %7 : vector<32x4096xi32> to vector<32x4096xf32>
    %cst = arith.constant dense<0.000000e+00> : vector<32x4096xf32>
    %9 = tpu.matmul %0, %8, %cst {dimension_numbers = #tpu.dot_dimension_numbers<[1], [0], [0], [1], [0, 0, 1, 1], [], []>} : vector<32x32xf32>, vector<32x4096xf32>, vector<32x4096xf32> -> vector<32x4096xf32>
    %10 = vector.extract_strided_slice %9 {offsets = [0, 0], sizes = [32, 2048], strides = [1, 1]} : vector<32x4096xf32> to vector<32x2048xf32>
    %11 = vector.extract_strided_slice %9 {offsets = [0, 2048], sizes = [32, 2048], strides = [1, 1]} : vector<32x4096xf32> to vector<32x2048xf32>
    %12 = arith.mulf %10, %11 : vector<32x2048xf32>
    %c0_4 = arith.constant 0 : index
    %c0_5 = arith.constant 0 : index
    %13 = vector.load %arg3[%c0_4, %c0_5] : memref<64x32xf32, #tpu.memory_space<vmem>>, vector<64x32xf32>
    %cst_6 = arith.constant dense<0.000000e+00> : vector<64x2048xf32>
    %14 = tpu.matmul %13, %12, %cst_6 {dimension_numbers = #tpu.dot_dimension_numbers<[1], [0], [0], [1], [0, 0, 1, 1], [], []>} : vector<64x32xf32>, vector<32x2048xf32>, vector<64x2048xf32> -> vector<64x2048xf32>
    %c0_7 = arith.constant 0 : index
    %c0_8 = arith.constant 0 : index
    %15 = vector.load %arg4[%c0_7, %c0_8] : memref<64x1xf32, #tpu.memory_space<vmem>>, vector<64x1xf32>
    %16 = vector.broadcast %15 : vector<64x1xf32> to vector<64x2048xf32>
    %17 = arith.addf %14, %16 : vector<64x2048xf32>
    %cst_9 = arith.constant 0.000000e+00 : f32
    %18 = vector.broadcast %cst_9 : f32 to vector<64x2048xf32>
    %19 = arith.maximumf %17, %18 : vector<64x2048xf32>
    %c0_10 = arith.constant 0 : index
    %c0_11 = arith.constant 0 : index
    %20 = vector.load %arg5[%c0_10, %c0_11] : memref<1x64xf32, #tpu.memory_space<vmem>>, vector<1x64xf32>
    %cst_12 = arith.constant dense<0.000000e+00> : vector<1x2048xf32>
    %21 = tpu.matmul %20, %19, %cst_12 {dimension_numbers = #tpu.dot_dimension_numbers<[1], [0], [0], [1], [0, 0, 1, 1], [], []>} : vector<1x64xf32>, vector<64x2048xf32>, vector<1x2048xf32> -> vector<1x2048xf32>
    %c0_13 = arith.constant 0 : index
    %c0_14 = arith.constant 0 : index
    %22 = vector.load %arg6[%c0_13, %c0_14] : memref<1x1xf32, #tpu.memory_space<vmem>>, vector<1x1xf32>
    %23 = vector.broadcast %22 : vector<1x1xf32> to vector<1x2048xf32>
    %24 = arith.addf %21, %23 : vector<1x2048xf32>
    %c0_15 = arith.constant 0 : index
    %c0_16 = arith.constant 0 : index
    %25 = vector.load %arg7[%c0_15, %c0_16] : memref<1x2048xf32, #tpu.memory_space<vmem>>, vector<1x2048xf32>
    tpu.vector_store %arg7[%c0_15, %c0_16], %24 {strides = array<i32>} : memref<1x2048xf32, #tpu.memory_space<vmem>>, vector<1x2048xf32>,
    return
  }
  func.func @transform_0(%arg0: i32) -> (i32, i32) {
    %c0_i32 = arith.constant 0 : i32
    %c0_i32_0 = arith.constant 0 : i32
    %c0_i32_1 = arith.constant 0 : i32
    return %c0_i32, %c0_i32_0 : i32, i32
  }
  func.func @transform_1(%arg0: i32) -> (i32, i32) {
    %c0_i32 = arith.constant 0 : i32
    %c0_i32_0 = arith.constant 0 : i32
    return %c0_i32, %arg0 : i32, i32
  }
  func.func @transform_2(%arg0: i32) -> (i32, i32) {
    %c0_i32 = arith.constant 0 : i32
    %c0_i32_0 = arith.constant 0 : i32
    %c0_i32_1 = arith.constant 0 : i32
    return %c0_i32, %c0_i32_0 : i32, i32
  }
  func.func @transform_3(%arg0: i32) -> (i32, i32) {
    %c0_i32 = arith.constant 0 : i32
    %c0_i32_0 = arith.constant 0 : i32
    %c0_i32_1 = arith.constant 0 : i32
    return %c0_i32, %c0_i32_0 : i32, i32
  }
  func.func @transform_4(%arg0: i32) -> (i32, i32) {
    %c0_i32 = arith.constant 0 : i32
    %c0_i32_0 = arith.constant 0 : i32
    %c0_i32_1 = arith.constant 0 : i32
    return %c0_i32, %c0_i32_0 : i32, i32
  }
  func.func @transform_5(%arg0: i32) -> (i32, i32) {
    %c0_i32 = arith.constant 0 : i32
    %c0_i32_0 = arith.constant 0 : i32
    %c0_i32_1 = arith.constant 0 : i32
    return %c0_i32, %c0_i32_0 : i32, i32
  }
  func.func @transform_6(%arg0: i32) -> (i32, i32) {
    %c0_i32 = arith.constant 0 : i32
    %c0_i32_0 = arith.constant 0 : i32
    return %c0_i32, %arg0 : i32, i32
  }
}

</mosaic_0001>

<bundles_post_ra>
// kernel: tpu_custom_call.1
= control target key start
LH: loop header
LB: loop body
LE: loop exit
PB: predicated region body
PF: predicated region fallthrough
CT: control target
= control target key end

     0   :  { %s6672_s0 = inlined_call_operand.vmem [shape: f32[32,32], index: 0, kind: input, shape index: {}]   ;;  %s6673_s1 = inlined_call_operand.vmem [shape: s32[2,2048], index: 1, kind: input, shape index: {}]   ;;  %s6674_s2 = inlined_call_operand.vmem [shape: f32[64,32], index: 2, kind: input, shape index: {}]   ;;  %s6675_s3 = inlined_call_operand.vmem [shape: f32[64,1], index: 3, kind: input, shape index: {}]   ;;  %s6676_s4 = inlined_call_operand.vmem [shape: f32[1,64], index: 4, kind: input, shape index: {}]   ;;  %s6677_s5 = inlined_call_operand.<no memory space> [shape: f32[1,1], index: 5, kind: input, shape index: {}]   ;;  %s6678_s6 = inlined_call_operand.hbm [shape: f32[1,2048], index: 6, kind: output, shape index: {}]  }
   0x1   :  { %v11_v0 = vstv %s6677_s5 }
   0x2   :  { %12 = vst [vmem:[#allocation2] sm:$0x1] %v11_v0 }
   0x3   :  { %v37_v1 = vlaneseq  ;;  %v6680_v2 = vmov 0.0   ;;  %v30_v4 = vld [vmem:[%s6673_s1] ss:$2 sm:$0xff] }
   0x4   :  { %759 = vmatprep.mubr.f32.mxu0 %v6680_v2  ;;  %848 = vmatprep.mubr.f32.mxu1 %v6680_v2 }
   0x5   :  { %v4801_v3 = vshrl.u32 %v37_v1, 7 }
   0x7   :  { %6684 = vst [vmem:[#allocation6_spill] sm:$0xff] %v4801_v3 }
   0x8   :  { %13 = vsyncpa [#allocation4], 0  ;;  %v4807_v5 = vsub.s32 0, %v4801_v3  ;;  %v4810_v6 = vsub.s32 1, %v4801_v3  ;;  %v4813_v7 = vsub.s32 3, %v4801_v3  ;;  %v4816_v8 = vadd.s32 8, %v4801_v3 }
   0x9   :  { %v4819_v9 = vsub.s32 2, %v4801_v3  ;;  %v4822_v10 = vadd.s32 16, %v4801_v3  ;;  %v4825_v11 = vsub.s32 5, %v4801_v3  ;;  %v4831_v15 = vsub.s32 7, %v4801_v3  ;;  %v4869_v30 = vld [vmem:[%s6673_s1 + $0x10] ss:$2 sm:$0xff] }
   0xa   :  { %6685 = vst [vmem:[#allocation7_spill] sm:$0xff] %v4807_v5  ;;  %v44_v12 = vrot.slane %v30_v4, %v4810_v6  ;;  %v52_v13 = vrot.slane %v30_v4, %v4813_v7  ;;  %v40_v14 = vrot.slane %v30_v4, %v4807_v5  ;;  %v4835_v17 = vadd.s32 24, %v4801_v3  ;;  %v4898_v35 = vld [vmem:[%s6672_s0] sm:$0xff]  ;;  %v4927_v39 = vld [vmem:[%s6672_s0 + $0x8] sm:$0xff]  ;;  %v4972_v42 = vld [vmem:[%s6672_s0 + $0x10] sm:$0xff] }
   0xb   :  { %v48_v16 = vrot.slane %v30_v4, %v4819_v9  ;;  %v4838_v18 = vsub.s32 4, %v4801_v3  ;;  %v4841_v19 = vsub.s32 6, %v4801_v3  ;;  %v60_v23 = vrot.slane %v30_v4, %v4825_v11  ;;  %v5004_v49 = vld [vmem:[%s6672_s0 + $0x18] sm:$0xff]  ;;  %v5017_v51 = vld [vmem:[%s6673_s1 + $0x1] ss:$2 sm:$0xff] }
   0xc   :  { %v177_v20 = vrot.slane %v44_v12, %v4807_v5  ;;  %v185_v21 = vrot.slane %v52_v13, %v4807_v5  ;;  %v173_v22 = vrot.slane %v40_v14, %v4807_v5  ;;  %v68_v25 = vrot.slane %v30_v4, %v4831_v15  ;;  %v5172_v13 = vld [vmem:[%s6673_s1 + $0x11] ss:$2 sm:$0xff] }
   0xd   :  { %v181_v24 = vrot.slane %v48_v16, %v4807_v5  ;;  %v56_v26 = vrot.slane %v30_v4, %v4838_v18  ;;  %v64_v27 = vrot.slane %v30_v4, %v4841_v19  ;;  %v4757_v28 = vmov 1.0|1.0  }
   0xe   :  { %vm299_vm0 = vcmp.eq.s32.totalorder %v4801_v3, %v177_v20  ;;  %vm331_vm1 = vcmp.eq.s32.totalorder %v4816_v8, %v177_v20  ;;  %vm301_vm2 = vcmp.eq.s32.totalorder %v4801_v3, %v185_v21  ;;  %vm333_vm3 = vcmp.eq.s32.totalorder %v4816_v8, %v185_v21 }
   0xf   :  { %vm4405_vm4 = vmpackc.low %vm331_vm1, %vm299_vm0  ;;  %vm298_vm5 = vcmp.eq.s32.totalorder %v4801_v3, %v173_v22  ;;  %vm330_vm6 = vcmp.eq.s32.totalorder %v4816_v8, %v173_v22  ;;  %vm300_vm7 = vcmp.eq.s32.totalorder %v4801_v3, %v181_v24  ;;  %vm332_vm8 = vcmp.eq.s32.totalorder %v4816_v8, %v181_v24 }
  0x10   :  { %4406 = vmatprep.subr.msk.bf16.mxu0 %vm4405_vm4, %v4757_v28  ;;  %vm4413_vm9 = vmpackc.low %vm333_vm3, %vm301_vm2  ;;  %vm363_vm10 = vcmp.eq.s32.totalorder %v4822_v10, %v177_v20  ;;  %vm395_vm11 = vcmp.eq.s32.totalorder %v4835_v17, %v177_v20  ;;  %v193_v29 = vrot.slane %v60_v23, %v4807_v5  ;;  %vm365_vm13 = vcmp.eq.s32.totalorder %v4822_v10, %v185_v21 }
  0x11   :  { %4414 = vmatprep.subr.msk.bf16.mxu1 %vm4413_vm9, %v4757_v28  ;;  %vm4407_vm12 = vmpackc.low %vm330_vm6, %vm298_vm5  ;;  %vm397_vm14 = vcmp.eq.s32.totalorder %v4835_v17, %v185_v21  ;;  %vm362_vm0 = vcmp.eq.s32.totalorder %v4822_v10, %v173_v22  ;;  %vm394_vm1 = vcmp.eq.s32.totalorder %v4835_v17, %v173_v22  ;;  %v201_v31 = vrot.slane %v68_v25, %v4807_v5 }
  0x12   :  { %4408 = vmatpush1.bf16.msk.msra.mxu0 %vm4407_vm12, %v4757_v28  ;;  %vm4415_vm15 = vmpackc.low %vm332_vm8, %vm300_vm7  ;;  %v189_v32 = vrot.slane %v56_v26, %v4807_v5  ;;  %vm364_vm3 = vcmp.eq.s32.totalorder %v4822_v10, %v181_v24  ;;  %vm396_vm4 = vcmp.eq.s32.totalorder %v4835_v17, %v181_v24  ;;  %v197_v33 = vrot.slane %v64_v27, %v4807_v5 }
  0x13   :  { %4416 = vmatpush1.bf16.msk.msra.mxu1 %vm4415_vm15, %v4757_v28  ;;  %vm4409_vm2 = vmpackc.low %vm395_vm11, %vm363_vm10  ;;  %vm303_vm6 = vcmp.eq.s32.totalorder %v4801_v3, %v193_v29  ;;  %vm335_vm7 = vcmp.eq.s32.totalorder %v4816_v8, %v193_v29  ;;  %v76_v34 = vrot.slane %v4869_v30, %v4810_v6  ;;  %vm305_vm9 = vcmp.eq.s32.totalorder %v4801_v3, %v201_v31 }
  0x14   :  { %4410 = vmatprep.subr.msk.bf16.mxu0 %vm4409_vm2, %v4757_v28  ;;  %vm4417_vm5 = vmpackc.low %vm397_vm14, %vm365_vm13  ;;  %vm337_vm10 = vcmp.eq.s32.totalorder %v4816_v8, %v201_v31  ;;  %vm6679_vm12 = vcmask 261120   ;;  %vm302_vm13 = vcmp.eq.s32.totalorder %v4801_v3, %v189_v32  ;;  %vm334_vm14 = vcmp.eq.s32.totalorder %v4816_v8, %v189_v32 }
  0x15   :  { %4418 = vmatprep.subr.msk.bf16.mxu1 %vm4417_vm5, %v4757_v28  ;;  %vm4411_vm8 = vmpackc.low %vm394_vm1, %vm362_vm0  ;;  %vm304_vm0 = vcmp.eq.s32.totalorder %v4801_v3, %v197_v33  ;;  %vm336_vm1 = vcmp.eq.s32.totalorder %v4816_v8, %v197_v33  ;;  %v84_v36 = vrot.slane %v4869_v30, %v4813_v7  ;;  %v4911_v37 = vrot.slane %v76_v34, %v4807_v5 }
  0x16   :  { %4412 = vmatpush1.bf16.msk.msra.mxu0 %vm4411_vm8, %v4757_v28  ;;  %vm4419_vm11 = vmpackc.low %vm396_vm4, %vm364_vm3  ;;  %vm367_vm3 = vcmp.eq.s32.totalorder %v4822_v10, %v193_v29  ;;  %vm399_vm4 = vcmp.eq.s32.totalorder %v4835_v17, %v193_v29  ;;  %v72_v40 = vrot.slane %v4869_v30, %v4807_v5  ;;  %v80_v41 = vrot.slane %v4869_v30, %v4819_v9 }
  0x17   :  { %4420 = vmatpush1.bf16.msk.msra.mxu1 %vm4419_vm11, %v4757_v28  ;;  %vm4421_vm15 = vmpackc.low %vm335_vm7, %vm303_vm6  ;;  %vm369_vm6 = vcmp.eq.s32.totalorder %v4822_v10, %v201_v31  ;;  %vm401_vm7 = vcmp.eq.s32.totalorder %v4835_v17, %v201_v31  ;;  %v4919_v38 = vrot.slane %v84_v36, %v4807_v5  ;;  %v92_v43 = vrot.slane %v4869_v30, %v4825_v11 }
  0x18   :  { %4422 = vmatprep.subr.msk.bf16.mxu0 %vm4421_vm15, %v4757_v28  ;;  %vm4429_vm2 = vmpackc.low %vm337_vm10, %vm305_vm9  ;;  %vm366_vm9 = vcmp.eq.s32.totalorder %v4822_v10, %v189_v32  ;;  %vm398_vm10 = vcmp.eq.s32.totalorder %v4835_v17, %v189_v32  ;;  %v205_v44 = vrot.slane %v72_v40, %v4807_v5  ;;  %v100_v45 = vrot.slane %v4869_v30, %v4831_v15 }
  0x19   :  { %4149 = vmatmul.mubr.msk.f32.vlgmr.msra.gmra.mrb[0].mxu0 %vm6679_vm12, %v4898_v35  ;;  %4430 = vmatprep.subr.msk.bf16.mxu1 %vm4429_vm2, %v4757_v28  ;;  %vm4423_vm5 = vmpackc.low %vm334_vm14, %vm302_vm13  ;;  %vm368_vm13 = vcmp.eq.s32.totalorder %v4822_v10, %v197_v33  ;;  %vm400_vm14 = vcmp.eq.s32.totalorder %v4835_v17, %v197_v33  ;;  %v88_v46 = vrot.slane %v4869_v30, %v4838_v18  ;;  %v6761_v57 = vmov 0 }
  0x1a   :  { %4161 = vmatmul.mubr.msk.f32.vlgmr.msra.gmra.mrb[0].mxu1 %vm6679_vm12, %v4898_v35  ;;  %765 = vmatprep.mubr.f32.mxu0 %v6680_v2  ;;  %vm4431_vm8 = vmpackc.low %vm336_vm1, %vm304_vm0  ;;  %vm307_vm0 = vcmp.eq.s32.totalorder %v4801_v3, %v4911_v37  ;;  %vm339_vm1 = vcmp.eq.s32.totalorder %v4816_v8, %v4911_v37  ;;  %v213_v47 = vrot.slane %v80_v41, %v4807_v5  ;;  %v6770_v61 = vmov 0 }
  0x1b   :  { %854 = vmatprep.mubr.f32.mxu1 %v6680_v2  ;;  %4424 = vmatpush1.bf16.msk.msra.mxu0 %vm4423_vm5, %v4757_v28  ;;  %vm4425_vm11 = vmpackc.low %vm399_vm4, %vm367_vm3  ;;  %vm309_vm3 = vcmp.eq.s32.totalorder %v4801_v3, %v4919_v38  ;;  %vm341_vm4 = vcmp.eq.s32.totalorder %v4816_v8, %v4919_v38  ;;  %v96_v48 = vrot.slane %v4869_v30, %v4841_v19  ;;  %v6783_v63 = vmov 0 }
  0x1c   :  { %4432 = vmatpush1.bf16.msk.msra.mxu1 %vm4431_vm8, %v4757_v28  ;;  %4426 = vmatprep.subr.msk.bf16.mxu0 %vm4425_vm11, %v4757_v28  ;;  %vm4433_vm15 = vmpackc.low %vm401_vm7, %vm369_vm6  ;;  %vm371_vm8 = vcmp.eq.s32.totalorder %v4822_v10, %v4911_v37  ;;  %v5012_v50 = vrot.slane %v92_v43, %v4807_v5  ;;  %vm338_vm11 = vcmp.eq.s32.totalorder %v4816_v8, %v205_v44  ;;  %v6787_v0 = vmov 0 }
  0x1d   :  { %4150 = vmatmul.mubr.msk.f32.gmra.mrb[2].mxu0 %vm6679_vm12, %v4927_v39  ;;  %4434 = vmatprep.subr.msk.bf16.mxu1 %vm4433_vm15, %v4757_v28  ;;  %vm4427_vm2 = vmpackc.low %vm398_vm10, %vm366_vm9  ;;  %vm403_vm9 = vcmp.eq.s32.totalorder %v4835_v17, %v4911_v37  ;;  %vm306_vm10 = vcmp.eq.s32.totalorder %v4801_v3, %v205_v44  ;;  %v5022_v52 = vrot.slane %v100_v45, %v4807_v5  ;;  %v6732_v45 = vmov 0 }
  0x1e   :  { %4162 = vmatmul.mubr.msk.f32.gmra.mrb[2].mxu1 %vm6679_vm12, %v4927_v39  ;;  %771 = vmatprep.mubr.f32.mxu0 %v6680_v2  ;;  %vm4435_vm5 = vmpackc.low %vm400_vm14, %vm368_vm13  ;;  %v5025_v53 = vrot.slane %v88_v46, %v4807_v5  ;;  %vm308_vm13 = vcmp.eq.s32.totalorder %v4801_v3, %v213_v47  ;;  %vm340_vm14 = vcmp.eq.s32.totalorder %v4816_v8, %v213_v47 }
  0x1f   :  { %860 = vmatprep.mubr.f32.mxu1 %v6680_v2  ;;  %4428 = vmatpush1.bf16.msk.msra.mxu0 %vm4427_vm2, %v4757_v28  ;;  %vm4437_vm6 = vmpackc.low %vm339_vm1, %vm307_vm0  ;;  %vm373_vm15 = vcmp.eq.s32.totalorder %v4822_v10, %v4919_v38  ;;  %v5034_v54 = vrot.slane %v96_v48, %v4807_v5  ;;  %vm405_vm0 = vcmp.eq.s32.totalorder %v4835_v17, %v4919_v38 }
  0x20   :  { %4436 = vmatpush1.bf16.msk.msra.mxu1 %vm4435_vm5, %v4757_v28  ;;  %4438 = vmatprep.subr.msk.bf16.mxu0 %vm4437_vm6, %v4757_v28  ;;  %vm4445_vm7 = vmpackc.low %vm341_vm4, %vm309_vm3  ;;  %vm370_vm1 = vcmp.eq.s32.totalorder %v4822_v10, %v205_v44  ;;  %v108_v55 = vrot.slane %v5017_v51, %v4810_v6  ;;  %vm402_vm3 = vcmp.eq.s32.totalorder %v4835_v17, %v205_v44 }
  0x21   :  { %4151 = vmatmul.mubr.msk.f32.gmra.mrb[4].mxu0 %vm6679_vm12, %v4972_v42  ;;  %4446 = vmatprep.subr.msk.bf16.mxu1 %vm4445_vm7, %v4757_v28  ;;  %vm5047_vm2 = vmpackc.low %vm338_vm11, %vm306_vm10  ;;  %vm311_vm6 = vcmp.eq.s32.totalorder %v4801_v3, %v5012_v50  ;;  %vm343_vm10 = vcmp.eq.s32.totalorder %v4816_v8, %v5012_v50  ;;  %vm312_vm4 = vcmp.eq.s32.totalorder %v4801_v3, %v5034_v54 }
  0x22   :  { %4163 = vmatmul.mubr.msk.f32.gmra.mrb[4].mxu1 %vm6679_vm12, %v4972_v42  ;;  %777 = vmatprep.mubr.f32.mxu0 %v6680_v2  ;;  %vm5058_vm7 = vmpackc.low %vm340_vm14, %vm308_vm13  ;;  %vm342_vm14 = vcmp.eq.s32.totalorder %v4816_v8, %v5025_v53  ;;  %vm344_vm5 = vcmp.eq.s32.totalorder %v4816_v8, %v5034_v54  ;;  %v5108_v60 = vrot.slane %v108_v55, %v4807_v5  ;;  %v6753_v55 = vmov 0 }
  0x23   :  { %866 = vmatprep.mubr.f32.mxu1 %v6680_v2  ;;  %vm5078_vm13 = vmpackc.low %vm403_vm9, %vm371_vm8  ;;  %vm407_vm9 = vcmp.eq.s32.totalorder %v4835_v17, %v5012_v50  ;;  %v116_v62 = vrot.slane %v5017_v51, %v4813_v7  ;;  %vm406_vm11 = vcmp.eq.s32.totalorder %v4835_v17, %v5025_v53  ;;  %v104_v1 = vrot.slane %v5017_v51, %v4807_v5 }
  0x24   :  { %vm5099_vm8 = vmpackc.low %vm405_vm0, %vm373_vm15  ;;  %vm376_vm0 = vcmp.eq.s32.totalorder %v4822_v10, %v5034_v54  ;;  %v112_v4 = vrot.slane %v5017_v51, %v4819_v9  ;;  %v120_v12 = vrot.slane %v5017_v51, %v4838_v18  ;;  %v124_v14 = vrot.slane %v5017_v51, %v4825_v11 }
  0x25   :  { %4152 = vmatmul.mubr.msk.f32.gmra.mrb[6].mxu0 %vm6679_vm12, %v5004_v49  ;;  %vm5118_vm15 = vmpackc.low %vm402_vm3, %vm370_vm1  ;;  %vm6696_vm1 = vcmp.eq.s32.totalorder %v4822_v10, %v213_v47  ;;  %v128_v16 = vrot.slane %v5017_v51, %v4841_v19  ;;  %v5196_v20 = vrot.slane %v116_v62, %v4807_v5  ;;  %v140_v23 = vrot.slane %v5172_v13, %v4810_v6 }
  0x26   :  { %4164 = vmatmul.mubr.msk.f32.gmra.mrb[6].mxu1 %vm6679_vm12, %v5004_v49  ;;  %937 = vmatprep.mubr.f32.mxu0 %v6680_v2  ;;  %v5199_v21 = vrot.slane %v120_v12, %v4807_v5  ;;  %v148_v24 = vrot.slane %v5172_v13, %v4813_v7  ;;  %v5228_v6 = vrot.slane %v104_v1, %v4807_v5  ;;  %v6779_v62 = vmov 0 }
  0x27   :  { %1026 = vmatprep.mubr.f32.mxu1 %v6680_v2  ;;  %v5208_v22 = vrot.slane %v128_v16, %v4807_v5  ;;  %v5231_v7 = vrot.slane %v112_v4, %v4807_v5  ;;  %v132_v26 = vrot.slane %v5017_v51, %v4831_v15  ;;  %v5249_v29 = vrot.slane %v124_v14, %v4807_v5 }
  0x28   :  { %v5289_v32 = vrot.slane %v140_v23, %v4807_v5  ;;  %v5292_v33 = vrot.slane %v148_v24, %v4807_v5  ;;  %v144_v37 = vrot.slane %v5172_v13, %v4819_v9  ;;  %v156_v9 = vrot.slane %v5172_v13, %v4825_v11 }
  0x29   :  { %4173 = vmatmul.mubr.msk.f32.vlgmr.msra.gmra.mrb[8].mxu0 %vm6679_vm12, %v4898_v35  ;;  %v5311_v36 = vrot.slane %v132_v26, %v4807_v5  ;;  %v164_v41 = vrot.slane %v5172_v13, %v4831_v15  ;;  %v6728_v15 = vmov 0  ;;  %v136_v44 = vrot.slane %v5172_v13, %v4807_v5 }
  0x2a   :  { %4185 = vmatmul.mubr.msk.f32.vlgmr.msra.gmra.mrb[8].mxu1 %vm6679_vm12, %v4898_v35  ;;  %943 = vmatprep.mubr.f32.mxu0 %v6680_v2  ;;  %v5366_v11 = vrot.slane %v144_v37, %v4807_v5  ;;  %v5436_v46 = vrot.slane %v156_v9, %v4807_v5  ;;  %v160_v51 = vrot.slane %v5172_v13, %v4841_v19  ;;  %v6791_v1 = vmov 0 }
  0x2b   :  { %1032 = vmatprep.mubr.f32.mxu1 %v6680_v2  ;;  %4440 = vmatpush1.bf16.msk.msra.mxu0 %vm5047_vm2, %v4757_v28  ;;  %vm6697_vm2 = vcmp.eq.s32.totalorder %v4835_v17, %v213_v47  ;;  %v6736_v47 = vmov 0  ;;  %v5453_v48 = vrot.slane %v164_v41, %v4807_v5  ;;  %v5570_v58 = vrot.slane %v136_v44, %v4807_v5 }
  0x2c   :  { %4448 = vmatpush1.bf16.msk.msra.mxu1 %vm5058_vm7, %v4757_v28  ;;  %4442 = vmatprep.subr.msk.bf16.mxu0 %vm5078_vm13, %v4757_v28  ;;  %vm5138_vm3 = vmpackc.low %vm6697_vm2, %vm6696_vm1  ;;  %vm408_vm7 = vcmp.eq.s32.totalorder %v4835_v17, %v5034_v54  ;;  %vm315_vm1 = vcmp.eq.s32.totalorder %v4801_v3, %v5108_v60  ;;  %vm347_vm2 = vcmp.eq.s32.totalorder %v4816_v8, %v5108_v60  ;;  %v6808_v16 = vmov 0 }
  0x2d   :  { %4174 = vmatmul.mubr.msk.f32.gmra.mrb[10].mxu0 %vm6679_vm12, %v4927_v39  ;;  %4450 = vmatprep.subr.msk.bf16.mxu1 %vm5099_vm8, %v4757_v28  ;;  %vm5159_vm13 = vmpackc.low %vm343_vm10, %vm311_vm6  ;;  %vm6702_vm6 = vcmp.eq.s32.totalorder %v4801_v3, %v5022_v52  ;;  %vm6703_vm10 = vcmp.eq.s32.totalorder %v4816_v8, %v5022_v52  ;;  %v5517_v54 = vrot.slane %v160_v51, %v4807_v5  ;;  %v6826_v24 = vmov 0 }
  0x2e   :  { %4186 = vmatmul.mubr.msk.f32.gmra.mrb[10].mxu1 %vm6679_vm12, %v4927_v39  ;;  %949 = vmatprep.mubr.f32.mxu0 %v6680_v2  ;;  %vm4461_vm8 = vmpackc.low %vm6703_vm10, %vm6702_vm6  ;;  %vm6709_vm10 = vcmp.eq.s32.totalorder %v4822_v10, %v5012_v50  ;;  %vm318_vm6 = vcmp.eq.s32.totalorder %v4801_v3, %v5199_v21  ;;  %v152_v50 = vrot.slane %v5172_v13, %v4838_v18  ;;  %v6745_v18 = vmov 0  ;;  %v2192_v13 = vld [vmem:[%s6675_s3 + $0x8] sm:$0xff] }
  0x2f   :  { %1038 = vmatprep.mubr.f32.mxu1 %v6680_v2  ;;  %4444 = vmatpush1.bf16.msk.msra.mxu0 %vm5118_vm15, %v4757_v28  ;;  %vm6704_vm15 = vcmp.eq.s32.totalorder %v4801_v3, %v5025_v53 }
  0x30   :  { %4452 = vmatpush1.bf16.msk.msra.mxu1 %vm5138_vm3, %v4757_v28  ;;  %4454 = vmatprep.subr.msk.bf16.mxu0 %vm5159_vm13, %v4757_v28  ;;  %vm5223_vm3 = vmpackc.low %vm342_vm14, %vm6704_vm15  ;;  %vm6712_vm13 = vcmp.eq.s32.totalorder %v4822_v10, %v5022_v52  ;;  %v5501_v19 = vrot.slane %v152_v50, %v4807_v5 }
  0x31   :  { %4175 = vmatmul.mubr.msk.f32.gmra.mrb[12].mxu0 %vm6679_vm12, %v4972_v42  ;;  %4462 = vmatprep.subr.msk.bf16.mxu1 %vm4461_vm8, %v4757_v28  ;;  %vm5244_vm14 = vmpackc.low %vm344_vm5, %vm312_vm4 }
  0x32   :  { %4187 = vmatmul.mubr.msk.f32.gmra.mrb[12].mxu1 %vm6679_vm12, %v4972_v42  ;;  %955 = vmatprep.mubr.f32.mxu0 %v6680_v2  ;;  %vm5262_vm4 = vmpackc.low %vm407_vm9, %vm6709_vm10  ;;  %vm6713_vm9 = vcmp.eq.s32.totalorder %v4835_v17, %v5022_v52  ;;  %v6740_v52 = vmov 0 }
  0x33   :  { %1044 = vmatprep.mubr.f32.mxu1 %v6680_v2  ;;  %vm5280_vm10 = vmpackc.low %vm6713_vm9, %vm6712_vm13  ;;  %vm6716_vm13 = vcmp.eq.s32.totalorder %v4822_v10, %v5025_v53  ;;  %v6750_v53 = vmov 0 }
  0x34   :  { %vm5302_vm9 = vmpackc.low %vm406_vm11, %vm6716_vm13  ;;  %vm6727_vm13 = vcmp.eq.s32.totalorder %v4816_v8, %v5199_v21 }
  0x35   :  { %4176 = vmatmul.mubr.msk.f32.gmra.mrb[14].mxu0 %vm6679_vm12, %v5004_v49  ;;  %vm5328_vm11 = vmpackc.low %vm408_vm7, %vm376_vm0  ;;  %vm6730_vm0 = vcmp.eq.s32.totalorder %v4801_v3, %v5208_v22 }
  0x36   :  { %4188 = vmatmul.mubr.msk.f32.gmra.mrb[14].mxu1 %vm6679_vm12, %v5004_v49  ;;  %1115 = vmatprep.mubr.f32.mxu0 %v6680_v2  ;;  %vm5353_vm7 = vmpackc.low %vm347_vm2, %vm315_vm1  ;;  %vm6723_vm1 = vcmp.eq.s32.totalorder %v4801_v3, %v5196_v20  ;;  %vm6724_vm2 = vcmp.eq.s32.totalorder %v4816_v8, %v5196_v20 }
  0x37   :  { %1204 = vmatprep.mubr.f32.mxu1 %v6680_v2  ;;  %vm5376_vm15 = vmpackc.low %vm6724_vm2, %vm6723_vm1  ;;  %vm6731_vm2 = vcmp.eq.s32.totalorder %v4816_v8, %v5208_v22 }
  0x38   :  { %vm5400_vm8 = vmpackc.low %vm6727_vm13, %vm318_vm6  ;;  %vm323_vm6 = vcmp.eq.s32.totalorder %v4801_v3, %v5289_v32 }
  0x39   :  { %4197 = vmatmul.mubr.msk.f32.vlgmr.msra.gmra.mrb[16].mxu0 %vm6679_vm12, %v4898_v35  ;;  %v6729_v15 = vsel %vm5400_vm8, 4294967295, %v6728_v15  ;;  %vm5427_vm5 = vmpackc.low %vm6731_vm2, %vm6730_vm0  ;;  %vm6734_vm0 = vcmp.eq.s32.totalorder %v4822_v10, %v5249_v29  ;;  %vm6735_vm2 = vcmp.eq.s32.totalorder %v4835_v17, %v5249_v29  ;;  %vm6789_vm8 = vcmp.eq.s32.totalorder %v4822_v10, %v5292_v33 }
  0x3a   :  { %4209 = vmatmul.mubr.msk.f32.vlgmr.msra.gmra.mrb[16].mxu1 %vm6679_vm12, %v4898_v35  ;;  %1121 = vmatprep.mubr.f32.mxu0 %v6680_v2  ;;  %v6733_v45 = vsel %vm5427_vm5, 4294967295, %v6732_v45  ;;  %vm5448_vm1 = vmpackc.low %vm6735_vm2, %vm6734_vm0  ;;  %vm6739_vm0 = vcmp.eq.s32.totalorder %v4835_v17, %v5311_v36  ;;  %vm6759_vm12 = vcmp.eq.s32.totalorder %v4801_v3, %v5292_v33 }
  0x3b   :  { %1210 = vmatprep.mubr.f32.mxu1 %v6680_v2  ;;  %4456 = vmatpush1.bf16.msk.msra.mxu0 %vm5223_vm3, %v4757_v28  ;;  %v6737_v47 = vsel %vm5448_vm1, 4294967295, %v6736_v47  ;;  %vm6738_vm3 = vcmp.eq.s32.totalorder %v4822_v10, %v5311_v36  ;;  %vm6786_vm1 = vcmp.eq.s32.totalorder %v4835_v17, %v5228_v6 }
  0x3c   :  { %4464 = vmatpush1.bf16.msk.msra.mxu1 %vm5244_vm14, %v4757_v28  ;;  %4458 = vmatprep.subr.msk.bf16.mxu0 %vm5262_vm4, %v4757_v28  ;;  %vm5471_vm2 = vmpackc.low %vm6739_vm0, %vm6738_vm3  ;;  %vm6742_vm4 = vcmask 261120   ;;  %vm6743_vm3 = vcmp.eq.s32.totalorder %v4822_v10, %v5199_v21  ;;  %vm6744_vm0 = vcmp.eq.s32.totalorder %v4835_v17, %v5199_v21 }
  0x3d   :  { %v6741_v52 = vsel %vm5471_vm2, 4294967295, %v6740_v52  ;;  %4198 = vmatmul.mubr.msk.f32.gmra.mrb[18].mxu0 %vm6742_vm4, %v4927_v39  ;;  %4466 = vmatprep.subr.msk.bf16.mxu1 %vm5280_vm10, %v4757_v28  ;;  %vm5492_vm13 = vmpackc.low %vm6744_vm0, %vm6743_vm3  ;;  %vm6748_vm3 = vcmp.eq.s32.totalorder %v4822_v10, %v5208_v22  ;;  %vm6749_vm0 = vcmp.eq.s32.totalorder %v4835_v17, %v5208_v22  ;;  %vm6785_vm2 = vcmp.eq.s32.totalorder %v4822_v10, %v5228_v6  ;;  %v2193_v22 = vld [vmem:[%s6675_s3 + $0x10] sm:$0xff] }
  0x3e   :  { %v6746_v18 = vsel %vm5492_vm13, 4294967295, %v6745_v18  ;;  %vm6747_vm10 = vmmov %vm6742_vm4  ;;  %1127 = vmatprep.mubr.f32.mxu0 %v6680_v2  ;;  %vm353_vm13 = vcmp.eq.s32.totalorder %v4816_v8, %v5311_v36 }
  0x3f   :  { %4210 = vmatmul.mubr.msk.f32.gmra.mrb[18].mxu1 %vm6747_vm10, %v4927_v39  ;;  %vm5512_vm14 = vmpackc.low %vm6749_vm0, %vm6748_vm3  ;;  %4460 = vmatpush1.bf16.msk.msra.mxu0 %vm5302_vm9, %v4757_v28  ;;  %vm6752_vm3 = vcmp.eq.s32.totalorder %v4816_v8, %v5289_v32  ;;  %vm6755_vm9 = vcmp.eq.s32.totalorder %v4801_v3, %v5228_v6 }
  0x40   :  { %v6751_v53 = vsel %vm5512_vm14, 4294967295, %v6750_v53  ;;  %1216 = vmatprep.mubr.f32.mxu1 %v6680_v2  ;;  %vm5533_vm0 = vmpackc.low %vm6752_vm3, %vm323_vm6  ;;  %4468 = vmatpush1.bf16.msk.msra.mxu1 %vm5328_vm11, %v4757_v28  ;;  %vm6756_vm6 = vcmp.eq.s32.totalorder %v4816_v8, %v5228_v6  ;;  %vm6760_vm11 = vcmp.eq.s32.totalorder %v4816_v8, %v5292_v33  ;;  %vm386_vm14 = vcmp.eq.s32.totalorder %v4822_v10, %v5570_v58 }
  0x41   :  { %v6754_v55 = vsel %vm5533_vm0, 4294967295, %v6753_v55  ;;  %4470 = vmatprep.subr.msk.bf16.mxu0 %vm5353_vm7, %v4757_v28  ;;  %vm5555_vm3 = vmpackc.low %vm6756_vm6, %vm6755_vm9  ;;  %4478 = vmatprep.subr.msk.bf16.mxu1 %vm5376_vm15, %v4757_v28  ;;  %vm6768_vm9 = vcmp.eq.s32.totalorder %v4822_v10, %v5108_v60 }
  0x42   :  { %vm5565_vm10 = vmpackc.low %vm6760_vm11, %vm6759_vm12  ;;  %vm6764_vm12 = vcmp.eq.s32.totalorder %v4801_v3, %v5231_v7  ;;  %vm6765_vm11 = vcmp.eq.s32.totalorder %v4816_v8, %v5231_v7 }
  0x43   :  { %v6762_v57 = vsel %vm5565_vm10, 4294967295, %v6761_v57  ;;  %vm6763_vm6 = vmmov %vm6742_vm4  ;;  %vm351_vm10 = vcmp.eq.s32.totalorder %v4816_v8, %v5249_v29 }
  0x44   :  { %4199 = vmatmul.mubr.msk.f32.gmra.mrb[20].mxu0 %vm6763_vm6, %v4972_v42  ;;  %vm5587_vm4 = vmpackc.low %vm6765_vm11, %vm6764_vm12  ;;  %vm6769_vm6 = vcmp.eq.s32.totalorder %v4835_v17, %v5108_v60  ;;  %vm6772_vm11 = vcmask 261120   ;;  %v6775_v60 = vmov 0  ;;  %vm6777_vm12 = vcmp.eq.s32.totalorder %v4801_v3, %v5366_v11 }
  0x45   :  { %vm5597_vm7 = vmpackc.low %vm6769_vm6, %vm6768_vm9  ;;  %4211 = vmatmul.mubr.msk.f32.gmra.mrb[20].mxu1 %vm6772_vm11, %v4972_v42  ;;  %1133 = vmatprep.mubr.f32.mxu0 %v6680_v2  ;;  %vm6773_vm9 = vcmp.eq.s32.totalorder %v4822_v10, %v5196_v20  ;;  %vm6774_vm6 = vcmp.eq.s32.totalorder %v4835_v17, %v5196_v20  ;;  %vm6778_vm11 = vcmp.eq.s32.totalorder %v4816_v8, %v5366_v11 }
  0x46   :  { %v6771_v61 = vsel %vm5597_vm7, 4294967295, %v6770_v61  ;;  %vm5616_vm0 = vmpackc.low %vm6774_vm6, %vm6773_vm9  ;;  %vm418_vm9 = vcmp.eq.s32.totalorder %v4835_v17, %v5570_v58  ;;  %1222 = vmatprep.mubr.f32.mxu1 %v6680_v2  ;;  %vm321_vm6 = vcmp.eq.s32.totalorder %v4801_v3, %v5311_v36  ;;  %vm6803_vm7 = vcmask 261120  }
  0x47   :  { %v6776_v60 = vsel %vm5616_vm0, 4294967295, %v6775_v60  ;;  %vm5628_vm15 = vmpackc.low %vm6778_vm11, %vm6777_vm12  ;;  %vm6781_vm12 = vcmp.eq.s32.totalorder %v4822_v10, %v5289_v32  ;;  %vm6782_vm11 = vcmp.eq.s32.totalorder %v4835_v17, %v5289_v32  ;;  %vm6790_vm0 = vcmp.eq.s32.totalorder %v4835_v17, %v5292_v33 }
  0x48   :  { %v6780_v62 = vsel %vm5628_vm15, 4294967295, %v6779_v62  ;;  %vm5647_vm15 = vmpackc.low %vm6782_vm11, %vm6781_vm12  ;;  %vm327_vm11 = vcmp.eq.s32.totalorder %v4801_v3, %v5436_v46 }
  0x49   :  { %v6784_v63 = vsel %vm5647_vm15, 4294967295, %v6783_v63  ;;  %vm5657_vm5 = vmpackc.low %vm6786_vm1, %vm6785_vm2  ;;  %vm6793_vm15 = vcmask 261120   ;;  %vm6794_vm1 = vcmp.eq.s32.totalorder %v4822_v10, %v5231_v7  ;;  %vm6795_vm2 = vcmp.eq.s32.totalorder %v4835_v17, %v5231_v7  ;;  %4212 = vmatmul.mubr.msk.f32.gmra.mrb[22].mxu1 %vm6803_vm7, %v5004_v49  ;;  %v2194_v7 = vld [vmem:[%s6675_s3 + $0x18] sm:$0xff] }
  0x4a   :  { %v6788_v0 = vsel %vm5657_vm5, 4294967295, %v6787_v0  ;;  %vm5667_vm12 = vmpackc.low %vm6790_vm0, %vm6789_vm8  ;;  %4200 = vmatmul.mubr.msk.f32.gmra.mrb[22].mxu0 %vm6793_vm15, %v5004_v49  ;;  %vm6798_vm8 = vcmp.eq.s32.totalorder %v4801_v3, %v5249_v29  ;;  %vm329_vm15 = vcmp.eq.s32.totalorder %v4801_v3, %v5453_v48  ;;  %1382 = vmatprep.mubr.f32.mxu1 %v6680_v2 }
  0x4b   :  { %v6792_v1 = vsel %vm5667_vm12, 4294967295, %v6791_v1  ;;  %vm5681_vm5 = vmpackc.low %vm6795_vm2, %vm6794_vm1  ;;  %1293 = vmatprep.mubr.f32.mxu0 %v6680_v2  ;;  %vm326_vm2 = vcmp.eq.s32.totalorder %v4801_v3, %v5501_v19 }
  0x4c   :  { %vm5688_vm0 = vmpackc.low %vm351_vm10, %vm6798_vm8  ;;  %vm6806_vm10 = vcmp.eq.s32.totalorder %v4822_v10, %v5366_v11  ;;  %vm6813_vm8 = vcmp.eq.s32.totalorder %v4816_v8, %v5453_v48 }
  0x4d   :  { %vm5692_vm12 = vmpackc.low %vm418_vm9, %vm386_vm14  ;;  %vm6807_vm14 = vcmp.eq.s32.totalorder %v4835_v17, %v5366_v11 }
  0x4e   :  { %vm5701_vm1 = vmpackc.low %vm353_vm13, %vm321_vm6  ;;  %vm6810_vm13 = vcmp.eq.s32.totalorder %v4816_v8, %v5436_v46  ;;  %vm328_vm6 = vcmp.eq.s32.totalorder %v4801_v3, %v5517_v54 }
  0x4f   :  { %vm5711_vm9 = vmpackc.low %vm6807_vm14, %vm6806_vm10  ;;  %vm6816_vm14 = vcmask 261120  }
  0x50   :  { %v6809_v16 = vsel %vm5711_vm9, 4294967295, %v6808_v16  ;;  %vm5721_vm7 = vmpackc.low %vm6810_vm13, %vm327_vm11  ;;  %4221 = vmatmul.mubr.msk.f32.vlgmr.msra.gmra.mrb[24].mxu0 %vm6816_vm14, %v4898_v35  ;;  %vm6817_vm9 = vcmp.eq.s32.totalorder %v4816_v8, %v5501_v19 }
  0x51   :  { %vm5730_vm10 = vmpackc.low %vm6813_vm8, %vm329_vm15  ;;  %1299 = vmatprep.mubr.f32.mxu0 %v6680_v2  ;;  %vm6821_vm15 = vcmp.eq.s32.totalorder %v4816_v8, %v5517_v54  ;;  %4472 = vmatpush1.bf16.msk.msra.mxu0 %vm5555_vm3, %v4757_v28  ;;  %vm6829_vm3 = vcmp.eq.s32.totalorder %v4822_v10, %v5453_v48 }
  0x52   :  { %vm5739_vm11 = vmpackc.low %vm6817_vm9, %vm326_vm2  ;;  %vm6824_vm9 = vcmp.eq.s32.totalorder %v4822_v10, %v5436_v46  ;;  %vm6825_vm2 = vcmp.eq.s32.totalorder %v4835_v17, %v5436_v46 }
  0x53   :  { %vm6820_vm13 = vmmov %vm6816_vm14 }
  0x54   :  { %4233 = vmatmul.mubr.msk.f32.vlgmr.msra.gmra.mrb[24].mxu1 %vm6820_vm13, %v4898_v35  ;;  %vm5749_vm8 = vmpackc.low %vm6821_vm15, %vm328_vm6  ;;  %vm6828_vm6 = vnez %v6771_v61  ;;  %vm6830_vm13 = vcmp.eq.s32.totalorder %v4835_v17, %v5453_v48 }
  0x55   :  { %1388 = vmatprep.mubr.f32.mxu1 %v6680_v2  ;;  %vm5763_vm14 = vmpackc.low %vm6825_vm2, %vm6824_vm9  ;;  %4480 = vmatpush1.bf16.msk.msra.mxu1 %vm5587_vm4, %v4757_v28  ;;  %vm6833_vm9 = vcmask 261120   ;;  %vm6834_vm4 = vnez %v6776_v60  ;;  %vm6835_vm2 = vcmp.eq.s32.totalorder %v4822_v10, %v5501_v19  ;;  %v4758_v60 = vmov 0  }
  0x56   :  { %v6827_v24 = vsel %vm5763_vm14, 4294967295, %v6826_v24  ;;  %4474 = vmatprep.subr.msk.bf16.mxu0 %vm6828_vm6, %v4757_v28  ;;  %vm5779_vm15 = vmpackc.low %vm6830_vm13, %vm6829_vm3  ;;  %4222 = vmatmul.mubr.msk.f32.gmra.mrb[26].mxu0 %vm6833_vm9, %v4927_v39  ;;  %vm6836_vm6 = vcmp.eq.s32.totalorder %v4835_v17, %v5501_v19  ;;  %vm6840_vm13 = vcmp.eq.s32.totalorder %v4822_v10, %v5517_v54 }
  0x57   :  { %4482 = vmatprep.subr.msk.bf16.mxu1 %vm6834_vm4, %v4757_v28  ;;  %vm5794_vm14 = vmpackc.low %vm6836_vm6, %vm6835_vm2  ;;  %1305 = vmatprep.mubr.f32.mxu0 %v6680_v2  ;;  %vm6844_vm2 = vnez %v6788_v0 }
  0x58   :  { %vm6839_vm3 = vmmov %vm6833_vm9  ;;  %vm6841_vm9 = vcmp.eq.s32.totalorder %v4835_v17, %v5517_v54  ;;  %4476 = vmatpush1.bf16.msk.msra.mxu0 %vm6844_vm2, %v4757_v28  ;;  %vm6851_vm2 = vnez %v6733_v45  ;;  %4730 = vset.pattern.permute.xlu0 %v4758_v60 }
  0x59   :  { %4234 = vmatmul.mubr.msk.f32.gmra.mrb[26].mxu1 %vm6839_vm3, %v4927_v39  ;;  %vm5807_vm4 = vmpackc.low %vm6841_vm9, %vm6840_vm13  ;;  %4486 = vmatprep.subr.msk.bf16.mxu0 %vm5688_vm0, %v4757_v28  ;;  %vm6850_vm9 = vnez %v6729_v15 }
  0x5a   :  { %1394 = vmatprep.mubr.f32.mxu1 %v6680_v2  ;;  %4484 = vmatpush1.bf16.msk.msra.mxu1 %vm5681_vm5, %v4757_v28  ;;  %vm6845_vm6 = vmmov %vm6839_vm3 }
  0x5b   :  { %4223 = vmatmul.mubr.msk.f32.gmra.mrb[28].mxu0 %vm6845_vm6, %v4972_v42  ;;  %4494 = vmatprep.subr.msk.bf16.mxu1 %vm5701_vm1, %v4757_v28  ;;  %vm6846_vm5 = vmmov %vm6839_vm3  ;;  %vm6852_vm6 = vnez %v6737_v47 }
  0x5c   :  { %1311 = vmatprep.mubr.f32.mxu0 %v6680_v2  ;;  %vm6847_vm13 = vmmov %vm6839_vm3  ;;  %4731 = vset.pattern.permute.xlu1 %v4758_v60 }
  0x5d   :  { %4235 = vmatmul.mubr.msk.f32.gmra.mrb[28].mxu1 %vm6839_vm3, %v4972_v42  ;;  %vm6848_vm0 = vmmov %vm6839_vm3  ;;  %2211 = vperm.xlu1 %4731, %v2193_v22   ;;  %v2195_v22 = vld [vmem:[%s6675_s3 + $0x20] sm:$0xff] }
  0x5e   :  { %1400 = vmatprep.mubr.f32.mxu1 %v6680_v2  ;;  %vm6849_vm1 = vmmov %vm6848_vm0 }
  0x5f   :  { %4224 = vmatmul.mubr.msk.f32.gmra.mrb[30].mxu0 %vm6846_vm5, %v5004_v49  ;;  %vm6853_vm3 = vmmov %vm6848_vm0  ;;  %vm6854_vm5 = vnez %v6741_v52 }
  0x60   :  { %1471 = vmatprep.mubr.f32.mxu0 %v6680_v2 }
  0x61   :  { %4236 = vmatmul.mubr.msk.f32.gmra.mrb[30].mxu1 %vm6847_vm13, %v5004_v49  ;;  %vm6855_vm13 = vmmov %vm6848_vm0  ;;  %2216 = vperm.xlu1 %4731, %v2194_v7   ;;  %v2196_v7 = vld [vmem:[%s6675_s3 + $0x28] sm:$0xff] }
  0x62   :  { %1560 = vmatprep.mubr.f32.mxu1 %v6680_v2 }
  0x63   :  { %4245 = vmatmul.mubr.msk.f32.vlgmr.msra.gmra.mrb[32].mxu0 %vm6848_vm0, %v4898_v35  ;;  %vm6856_vm0 = vnez %v6746_v18 }
  0x64   :  { %1477 = vmatprep.mubr.f32.mxu0 %v6680_v2  ;;  %4488 = vmatpush1.bf16.msk.msra.mxu0 %vm6850_vm9, %v4757_v28  ;;  %vm6858_vm9 = vnez %v6754_v55 }
  0x65   :  { %4257 = vmatmul.mubr.msk.f32.vlgmr.msra.gmra.mrb[32].mxu1 %vm6849_vm1, %v4898_v35  ;;  %4490 = vmatprep.subr.msk.bf16.mxu0 %vm6852_vm6, %v4757_v28  ;;  %vm6857_vm1 = vnez %v6751_v53  ;;  %vm6860_vm6 = vnez %v6762_v57 }
  0x66   :  { %1566 = vmatprep.mubr.f32.mxu1 %v6680_v2  ;;  %4496 = vmatpush1.bf16.msk.msra.mxu1 %vm6851_vm2, %v4757_v28  ;;  %vm6859_vm2 = vmmov %vm6853_vm3 }
  0x67   :  { %4246 = vmatmul.mubr.msk.f32.gmra.mrb[34].mxu0 %vm6853_vm3, %v4927_v39  ;;  %4498 = vmatprep.subr.msk.bf16.mxu1 %vm6854_vm5, %v4757_v28  ;;  %vm6861_vm3 = vmmov %vm6859_vm2 }
  0x68   :  { %1483 = vmatprep.mubr.f32.mxu0 %v6680_v2  ;;  %4492 = vmatpush1.bf16.msk.msra.mxu0 %vm6856_vm0, %v4757_v28  ;;  %vm6862_vm5 = vmmov %vm6859_vm2  ;;  %vm354_vm0 = vcmp.eq.s32.totalorder %v4816_v8, %v5570_v58 }
  0x69   :  { %4258 = vmatmul.mubr.msk.f32.gmra.mrb[34].mxu1 %vm6855_vm13, %v4927_v39  ;;  %4502 = vmatprep.subr.msk.bf16.mxu0 %vm6858_vm9, %v4757_v28  ;;  %vm322_vm13 = vcmp.eq.s32.totalorder %v4801_v3, %v5570_v58 }
  0x6a   :  { %1572 = vmatprep.mubr.f32.mxu1 %v6680_v2  ;;  %4500 = vmatpush1.bf16.msk.msra.mxu1 %vm6857_vm1, %v4757_v28  ;;  %vm6863_vm1 = vmmov %vm6859_vm2 }
  0x6b   :  { %4247 = vmatmul.mubr.msk.f32.gmra.mrb[36].mxu0 %vm6859_vm2, %v4972_v42  ;;  %4510 = vmatprep.subr.msk.bf16.mxu1 %vm6860_vm6, %v4757_v28  ;;  %vm4503_vm9 = vmpackc.low %vm354_vm0, %vm322_vm13  ;;  %vm6869_vm0 = vnez %v6792_v1 }
  0x6c   :  { %1489 = vmatprep.mubr.f32.mxu0 %v6680_v2  ;;  %vm6864_vm2 = vmmov %vm6863_vm1  ;;  %2226 = vperm.xlu1 %4731, %v2196_v7  }
  0x6d   :  { %4259 = vmatmul.mubr.msk.f32.gmra.mrb[36].mxu1 %vm6861_vm3, %v4972_v42  ;;  %vm6865_vm6 = vmmov %vm6863_vm1  ;;  %vm6866_vm3 = vnez %v6780_v62 }
  0x6e   :  { %1578 = vmatprep.mubr.f32.mxu1 %v6680_v2  ;;  %vm6868_vm13 = vmmov %vm6863_vm1 }
  0x6f   :  { %4248 = vmatmul.mubr.msk.f32.gmra.mrb[38].mxu0 %vm6862_vm5, %v5004_v49  ;;  %vm6867_vm5 = vnez %v6784_v63  ;;  %v2191_v63 = vld [vmem:[%s6675_s3] sm:$0xff] }
  0x70   :  { %1649 = vmatprep.mubr.f32.mxu0 %v6680_v2  ;;  %2201 = vperm.xlu0 %4730, %v2191_v63  }
  0x71   :  { %4260 = vmatmul.mubr.msk.f32.gmra.mrb[38].mxu1 %vm6863_vm1, %v5004_v49 }
  0x72   :  { %1738 = vmatprep.mubr.f32.mxu1 %v6680_v2 }
  0x73   :  { %4269 = vmatmul.mubr.msk.f32.vlgmr.msra.gmra.mrb[40].mxu0 %vm6864_vm2, %v4898_v35  ;;  %vm6871_vm2 = vmmov %vm6863_vm1 }
  0x74   :  { %1655 = vmatprep.mubr.f32.mxu0 %v6680_v2  ;;  %4504 = vmatpush1.bf16.msk.msra.mxu0 %vm4503_vm9, %v4757_v28  ;;  %vm6870_vm9 = vnez %v6809_v16 }
  0x75   :  { %4281 = vmatmul.mubr.msk.f32.vlgmr.msra.gmra.mrb[40].mxu1 %vm6865_vm6, %v4898_v35  ;;  %4506 = vmatprep.subr.msk.bf16.mxu0 %vm6867_vm5, %v4757_v28  ;;  %vm6872_vm6 = vmmov %vm6863_vm1  ;;  %vm6877_vm5 = vnez %v6827_v24 }
  0x76   :  { %1744 = vmatprep.mubr.f32.mxu1 %v6680_v2  ;;  %4512 = vmatpush1.bf16.msk.msra.mxu1 %vm6866_vm3, %v4757_v28  ;;  %vm6874_vm3 = vmmov %vm6863_vm1 }
  0x77   :  { %4270 = vmatmul.mubr.msk.f32.gmra.mrb[42].mxu0 %vm6868_vm13, %v4927_v39  ;;  %4514 = vmatprep.subr.msk.bf16.mxu1 %vm6869_vm0, %v4757_v28  ;;  %vm6878_vm13 = vmmov %vm6863_vm1 }
  0x78   :  { %1661 = vmatprep.mubr.f32.mxu0 %v6680_v2  ;;  %4508 = vmatpush1.bf16.msk.msra.mxu0 %vm5692_vm12, %v4757_v28  ;;  %vm6873_vm12 = vmmov %vm6863_vm1 }
  0x79   :  { %4282 = vmatmul.mubr.msk.f32.gmra.mrb[42].mxu1 %vm6863_vm1, %v4927_v39  ;;  %4518 = vmatprep.subr.msk.bf16.mxu0 %vm5721_vm7, %v4757_v28  ;;  %vm6875_vm7 = vmmov %vm6863_vm1 }
  0x7a   :  { %1750 = vmatprep.mubr.f32.mxu1 %v6680_v2  ;;  %4516 = vmatpush1.bf16.msk.msra.mxu1 %vm6870_vm9, %v4757_v28  ;;  %vm6879_vm0 = vmmov %vm6863_vm1 }
  0x7b   :  { %4271 = vmatmul.mubr.msk.f32.gmra.mrb[44].mxu0 %vm6871_vm2, %v4972_v42  ;;  %4526 = vmatprep.subr.msk.bf16.mxu1 %vm5730_vm10, %v4757_v28  ;;  %vm6876_vm10 = vmmov %vm6863_vm1 }
  0x7c   :  { %1667 = vmatprep.mubr.f32.mxu0 %v6680_v2  ;;  %vm6883_vm1 = vmmov %vm6879_vm0  ;;  %2206 = vperm.xlu0 %4730, %v2192_v13  }
  0x7d   :  { %4283 = vmatmul.mubr.msk.f32.gmra.mrb[44].mxu1 %vm6872_vm6, %v4972_v42  ;;  %vm6886_vm9 = vmmov %vm6879_vm0 }
  0x7e   :  { %1756 = vmatprep.mubr.f32.mxu1 %v6680_v2  ;;  %vm6887_vm2 = vmmov %vm6879_vm0 }
  0x7f   :  { %4272 = vmatmul.mubr.msk.f32.gmra.mrb[46].mxu0 %vm6873_vm12, %v5004_v49  ;;  %vm6888_vm6 = vmmov %vm6879_vm0 }
  0x80   :  { %1827 = vmatprep.mubr.f32.mxu0 %v6680_v2  ;;  %vm6889_vm12 = vmmov %vm6879_vm0  ;;  %2221 = vperm.xlu0 %4730, %v2195_v22  }
  0x81   :  { %4284 = vmatmul.mubr.msk.f32.gmra.mrb[46].mxu1 %vm6874_vm3, %v5004_v49  ;;  %vm6890_vm3 = vmmov %vm6879_vm0 }
  0x82   :  { %1916 = vmatprep.mubr.f32.mxu1 %v6680_v2 }
  0x83   :  { %4293 = vmatmul.mubr.msk.f32.vlgmr.msra.gmra.mrb[48].mxu0 %vm6875_vm7, %v4898_v35  ;;  %vm6891_vm7 = vmmov %vm6879_vm0 }
  0x84   :  { %1833 = vmatprep.mubr.f32.mxu0 %v6680_v2  ;;  %4520 = vmatpush1.bf16.msk.msra.mxu0 %vm5739_vm11, %v4757_v28  ;;  %vm6880_vm11 = vmmov %vm6879_vm0 }
  0x85   :  { %4305 = vmatmul.mubr.msk.f32.vlgmr.msra.gmra.mrb[48].mxu1 %vm6876_vm10, %v4898_v35  ;;  %4522 = vmatprep.subr.msk.bf16.mxu0 %vm6877_vm5, %v4757_v28  ;;  %vm6907_vm10 = vmmov %vm6879_vm0 }
  0x86   :  { %1922 = vmatprep.mubr.f32.mxu1 %v6680_v2  ;;  %4528 = vmatpush1.bf16.msk.msra.mxu1 %vm5749_vm8, %v4757_v28  ;;  %vm6881_vm8 = vmmov %vm6879_vm0 }
  0x87   :  { %4294 = vmatmul.mubr.msk.f32.gmra.mrb[50].mxu0 %vm6878_vm13, %v4927_v39  ;;  %4530 = vmatprep.subr.msk.bf16.mxu1 %vm5779_vm15, %v4757_v28  ;;  %vm6882_vm15 = vmmov %vm6879_vm0 }
  0x88   :  { %1839 = vmatprep.mubr.f32.mxu0 %v6680_v2  ;;  %4524 = vmatpush1.bf16.msk.msra.mxu0 %vm5794_vm14, %v4757_v28  ;;  %vm6884_vm14 = vmmov %vm6879_vm0 }
  0x89   :  { %4306 = vmatmul.mubr.msk.f32.gmra.mrb[50].mxu1 %vm6879_vm0, %v4927_v39  ;;  %vm6908_vm5 = vmmov %vm6879_vm0 }
  0x8a   :  { %1928 = vmatprep.mubr.f32.mxu1 %v6680_v2  ;;  %4532 = vmatpush1.bf16.msk.msra.mxu1 %vm5807_vm4, %v4757_v28  ;;  %vm6885_vm4 = vmmov %vm6879_vm0 }
  0x8b   :  { %4295 = vmatmul.mubr.msk.f32.gmra.mrb[52].mxu0 %vm6880_vm11, %v4972_v42  ;;  %vm6910_vm13 = vmmov %vm6879_vm0 }
  0x8c   :  { %1845 = vmatprep.mubr.f32.mxu0 %v6680_v2  ;;  %vm6911_vm11 = vmmov %vm6879_vm0 }
  0x8d   :  { %4307 = vmatmul.mubr.msk.f32.gmra.mrb[52].mxu1 %vm6881_vm8, %v4972_v42  ;;  %vm6912_vm8 = vmmov %vm6879_vm0 }
  0x8e   :  { %1934 = vmatprep.mubr.f32.mxu1 %v6680_v2 }
  0x8f   :  { %4296 = vmatmul.mubr.msk.f32.gmra.mrb[54].mxu0 %vm6882_vm15, %v5004_v49  ;;  %vm6913_vm15 = vmmov %vm6879_vm0 }
  0x90   :  { %2005 = vmatprep.mubr.f32.mxu0 %v6680_v2 }
  0x91   :  { %4308 = vmatmul.mubr.msk.f32.gmra.mrb[54].mxu1 %vm6883_vm1, %v5004_v49  ;;  %vm6914_vm1 = vmmov %vm6879_vm0 }
  0x92   :  { %2094 = vmatprep.mubr.f32.mxu1 %v6680_v2 }
  0x93   :  { %4317 = vmatmul.mubr.msk.f32.vlgmr.msra.gmra.mrb[56].mxu0 %vm6884_vm14, %v4898_v35  ;;  %vm6915_vm14 = vmmov %vm6879_vm0 }
  0x94   :  { %2011 = vmatprep.mubr.f32.mxu0 %v6680_v2 }
  0x95   :  { %4329 = vmatmul.mubr.msk.f32.vlgmr.msra.gmra.mrb[56].mxu1 %vm6885_vm4, %v4898_v35  ;;  %vm6916_vm4 = vmmov %vm6879_vm0 }
  0x96   :  { %2100 = vmatprep.mubr.f32.mxu1 %v6680_v2 }
  0x97   :  { %4318 = vmatmul.mubr.msk.f32.gmra.mrb[58].mxu0 %vm6886_vm9, %v4927_v39  ;;  %vm6917_vm9 = vmmov %vm6879_vm0 }
  0x98   :  { %2017 = vmatprep.mubr.f32.mxu0 %v6680_v2 }
  0x99   :  { %4330 = vmatmul.mubr.msk.f32.gmra.mrb[58].mxu1 %vm6887_vm2, %v4927_v39  ;;  %vm6918_vm2 = vmmov %vm6879_vm0 }
  0x9a   :  { %2106 = vmatprep.mubr.f32.mxu1 %v6680_v2 }
  0x9b   :  { %4319 = vmatmul.mubr.msk.f32.gmra.mrb[60].mxu0 %vm6888_vm6, %v4972_v42  ;;  %vm6919_vm6 = vmmov %vm6879_vm0 }
  0x9c   :  { %2023 = vmatprep.mubr.f32.mxu0 %v6680_v2 }
  0x9d   :  { %4331 = vmatmul.mubr.msk.f32.gmra.mrb[60].mxu1 %vm6889_vm12, %v4972_v42  ;;  %vm6920_vm12 = vmmov %vm6879_vm0 }
  0x9e   :  { %2112 = vmatprep.mubr.f32.mxu1 %v6680_v2 }
  0x9f   :  { %4320 = vmatmul.mubr.msk.f32.gmra.mrb[62].mxu0 %vm6890_vm3, %v5004_v49  ;;  %vm6923_vm3 = vmmov %vm6879_vm0 }
  0xa0   :  { %2327 = vmatprep.mubr.f32.mxu0 %v6680_v2 }
  0xa1   :  { %4332 = vmatmul.mubr.msk.f32.gmra.mrb[62].mxu1 %vm6891_vm7, %v5004_v49  ;;  %vm6925_vm7 = vmmov %vm6879_vm0 }
  0xa2   :  { %2440 = vmatprep.mubr.f32.mxu1 %v6680_v2 }
  0xec   :  { %v6000_v8 = vpop.f32.mrb[0].mxu0 }
  0xed   :  { %v6002_v10 = vpop.f32.mrb[0].mxu1  ;;  %v6004_v17 = vpop.f32.mrb[1].mxu0 }
  0xee   :  { %v6006_v28 = vpop.f32.mrb[1].mxu1 }
  0xf0   :  { %v6008_v35 = vpop.f32.mrb[2].mxu0 }
  0xf1   :  { %v6010_v39 = vpop.f32.mrb[2].mxu1  ;;  %v6012_v42 = vpop.f32.mrb[3].mxu0 }
  0xf2   :  { %v6014_v26 = vpop.f32.mrb[3].mxu1 }
  0xf4   :  { %v6016_v49 = vpop.f32.mrb[4].mxu0 }
  0xf5   :  { %v6018_v27 = vpop.f32.mrb[4].mxu1  ;;  %v6020_v29 = vpop.f32.mrb[5].mxu0 }
  0xf6   :  { %v6022_v30 = vpop.f32.mrb[5].mxu1 }
  0xf8   :  { %v6024_v31 = vpop.f32.mrb[6].mxu0 }
  0xf9   :  { %v6026_v32 = vpop.f32.mrb[6].mxu1  ;;  %v6028_v33 = vpop.f32.mrb[7].mxu0 }
  0xfa   :  { %v6030_v34 = vpop.f32.mrb[7].mxu1 }
  0xfc   :  { %v6032_v36 = vpop.f32.mrb[8].mxu0 }
  0xfd   :  { %v6034_v37 = vpop.f32.mrb[8].mxu1  ;;  %v6036_v38 = vpop.f32.mrb[9].mxu0 }
  0xfe   :  { %v6038_v9 = vpop.f32.mrb[9].mxu1 }
 0x100   :  { %v6040_v40 = vpop.f32.mrb[10].mxu0 }
 0x101   :  { %v6042_v11 = vpop.f32.mrb[10].mxu1  ;;  %v6044_v41 = vpop.f32.mrb[11].mxu0 }
 0x102   :  { %v6046_v43 = vpop.f32.mrb[11].mxu1 }
 0x104   :  { %v6048_v15 = vpop.f32.mrb[12].mxu0 }
 0x105   :  { %v6050_v44 = vpop.f32.mrb[12].mxu1  ;;  %v6052_v45 = vpop.f32.mrb[13].mxu0 }
 0x106   :  { %v6054_v46 = vpop.f32.mrb[13].mxu1 }
 0x108   :  { %v6056_v47 = vpop.f32.mrb[14].mxu0 }
 0x109   :  { %v6058_v48 = vpop.f32.mrb[14].mxu1  ;;  %v6060_v50 = vpop.f32.mrb[15].mxu0 }
 0x10a   :  { %v6062_v51 = vpop.f32.mrb[15].mxu1 }
 0x10c   :  { %v6064_v52 = vpop.f32.mrb[16].mxu0 }
 0x10d   :  { %v6066_v18 = vpop.f32.mrb[16].mxu1  ;;  %v6068_v19 = vpop.f32.mrb[17].mxu0 }
 0x10e   :  { %v6070_v53 = vpop.f32.mrb[17].mxu1 }
 0x110   :  { %v6072_v54 = vpop.f32.mrb[18].mxu0 }
 0x111   :  { %v6076_v56 = vpop.f32.mrb[19].mxu0 }
 0x112   :  { %v6074_v55 = vpop.f32.mrb[18].mxu1 }
 0x113   :  { %v6078_v57 = vpop.f32.mrb[19].mxu1 }
 0x117   :  { %v6080_v58 = vpop.f32.mrb[20].mxu0 }
 0x118   :  { %v6082_v59 = vpop.f32.mrb[20].mxu1  ;;  %v6084_v61 = vpop.f32.mrb[21].mxu0 }
 0x119   :  { %v6086_v62 = vpop.f32.mrb[21].mxu1 }
 0x11c   :  { %v6093_v1 = vpop.f32.mrb[22].mxu1 }
 0x11d   :  { %v6091_v0 = vpop.f32.mrb[22].mxu0  ;;  %v6097_v12 = vpop.f32.mrb[23].mxu1 }
 0x11e   :  { %v6095_v4 = vpop.f32.mrb[23].mxu0 }
 0x123   :  { %v6102_v14 = vpop.f32.mrb[24].mxu0 }
 0x124   :  { %v6106_v20 = vpop.f32.mrb[25].mxu0 }
 0x125   :  { %6893 = vst [vmem:[#allocation9_spill] sm:$0xff] %v6106_v20 }
 0x127   :  { %v6104_v16 = vpop.f32.mrb[24].mxu1 }
 0x128   :  { %6892 = vst [vmem:[#allocation8_spill] sm:$0xff] %v6104_v16  ;;  %v6108_v21 = vpop.f32.mrb[25].mxu1 }
 0x129   :  { %6894 = vst [vmem:[#allocation10_spill] sm:$0xff] %v6108_v21  ;;  %v6113_v23 = vpop.f32.mrb[26].mxu0 }
 0x12a   :  { %6895 = vst [vmem:[#allocation11_spill] sm:$0xff] %v6113_v23  ;;  %v6117_v25 = vpop.f32.mrb[27].mxu0 }
 0x12b   :  { %6897 = vst [vmem:[#allocation13_spill] sm:$0xff] %v6117_v25 }
 0x12c   :  { %v6115_v24 = vpop.f32.mrb[26].mxu1 }
 0x12d   :  { %6896 = vst [vmem:[#allocation12_spill] sm:$0xff] %v6115_v24  ;;  %v6119_v6 = vpop.f32.mrb[27].mxu1 }
 0x12e   :  { %6898 = vst [vmem:[#allocation14_spill] sm:$0xff] %v6119_v6  ;;  %v6124_v60 = vpop.f32.mrb[28].mxu0 }
 0x12f   :  { %6899 = vst [vmem:[#allocation15_spill] sm:$0xff] %v6124_v60  ;;  %v6128_v13 = vpop.f32.mrb[29].mxu0 }
 0x130   :  { %v6126_v63 = vpop.f32.mrb[28].mxu1  ;;  %6901 = vst [vmem:[#allocation17_spill] sm:$0xff] %v6128_v13 }
 0x131   :  { %6900 = vst [vmem:[#allocation16_spill] sm:$0xff] %v6126_v63  ;;  %v6130_v2 = vpop.f32.mrb[29].mxu1 }
 0x132   :  { %6902 = vst [vmem:[#allocation18_spill] sm:$0xff] %v6130_v2  ;;  %v6135_v3 = vpop.f32.mrb[30].mxu0 }
 0x133   :  { %6903 = vst [vmem:[#allocation19_spill] sm:$0xff] %v6135_v3  ;;  %v6139_v6 = vpop.f32.mrb[31].mxu0 }
 0x134   :  { %v6137_v5 = vpop.f32.mrb[30].mxu1  ;;  %6905 = vst [vmem:[#allocation21_spill] sm:$0xff] %v6139_v6 }
 0x135   :  { %6904 = vst [vmem:[#allocation20_spill] sm:$0xff] %v6137_v5  ;;  %v6141_v25 = vpop.f32.mrb[31].mxu1 }
 0x136   :  { %6906 = vst [vmem:[#allocation22_spill] sm:$0xff] %v6141_v25  ;;  %v1473_v13 = vpop.f32.mrb[32].mxu0  ;;  %v2197_v25 = vld [vmem:[%s6675_s3 + $0x30] sm:$0xff] }
 0x137   :  { %v2119_v2 = vmul.f32 %v1473_v13, %v6000_v8  ;;  %v1475_v60 = vpop.f32.mrb[33].mxu0  ;;  %2231 = vperm.xlu0 %4730, %v2197_v25  }
 0x138   :  { %v1562_v63 = vpop.f32.mrb[32].mxu1  ;;  %v2120_v22 = vmul.f32 %v1475_v60, %v6004_v17 }
 0x139   :  { %v2121_v24 = vmul.f32 %v1562_v63, %v6002_v10  ;;  %v1564_v3 = vpop.f32.mrb[33].mxu1 }
 0x13a   :  { %v2122_v5 = vmul.f32 %v1564_v3, %v6006_v28  ;;  %v1479_v6 = vpop.f32.mrb[34].mxu0  ;;  %v2198_v3 = vld [vmem:[%s6675_s3 + $0x38] sm:$0xff] }
 0x13b   :  { %v2135_v23 = vmul.f32 %v1479_v6, %v6008_v35  ;;  %v1481_v21 = vpop.f32.mrb[35].mxu0  ;;  %2236 = vperm.xlu1 %4731, %v2198_v3  }
 0x13c   :  { %v1568_v7 = vpop.f32.mrb[34].mxu1  ;;  %v2136_v13 = vmul.f32 %v1481_v21, %v6012_v42 }
 0x13d   :  { %v2137_v8 = vmul.f32 %v1568_v7, %v6010_v39  ;;  %v1570_v10 = vpop.f32.mrb[35].mxu1  ;;  %v4535_v63 = vpack.c.bf16 %v2135_v23, %v2119_v2 }
 0x13e   :  { %v2138_v17 = vmul.f32 %v1570_v10, %v6014_v26  ;;  %v4533_v60 = vpack.c.bf16 %v2136_v13, %v2120_v22  ;;  %v1485_v20 = vpop.f32.mrb[36].mxu0 }
 0x13f   :  { %v4543_v28 = vpack.c.bf16 %v2137_v8, %v2121_v24  ;;  %v2151_v35 = vmul.f32 %v1485_v20, %v6016_v49  ;;  %v1487_v16 = vpop.f32.mrb[37].mxu0 }
 0x140   :  { %v4541_v25 = vpack.c.bf16 %v2138_v17, %v2122_v5  ;;  %v1574_v6 = vpop.f32.mrb[36].mxu1  ;;  %v2152_v42 = vmul.f32 %v1487_v16, %v6020_v29  ;;  %4534 = vmatprep.subr.bf16.mxu0 %v4533_v60 }
 0x141   :  { %v2153_v39 = vmul.f32 %v1574_v6, %v6018_v27  ;;  %v1576_v2 = vpop.f32.mrb[37].mxu1  ;;  %4536 = vmatpush1.bf16.msra.mxu0 %v4535_v63 }
 0x142   :  { %v2154_v26 = vmul.f32 %v1576_v2, %v6022_v30  ;;  %4542 = vmatprep.subr.bf16.mxu1 %v4541_v25  ;;  %v1491_v21 = vpop.f32.mrb[38].mxu0 }
 0x143   :  { %4544 = vmatpush1.bf16.msra.mxu1 %v4543_v28  ;;  %v2167_v23 = vmul.f32 %v1491_v21, %v6024_v31  ;;  %v1493_v5 = vpop.f32.mrb[39].mxu0 }
 0x144   :  { %v1580_v24 = vpop.f32.mrb[38].mxu1  ;;  %v2168_v20 = vmul.f32 %v1493_v5, %v6028_v33  ;;  %v6175_v33 = vld [vmem:[%s6674_s2] sm:$0xff] }
 0x145   :  { %v2169_v49 = vmul.f32 %v1580_v24, %v6026_v32  ;;  %v1582_v22 = vpop.f32.mrb[39].mxu1  ;;  %v4539_v27 = vpack.c.bf16 %v2167_v23, %v2151_v35 }
 0x146   :  { %v2170_v29 = vmul.f32 %v1582_v22, %v6030_v34  ;;  %v4537_v7 = vpack.c.bf16 %v2168_v20, %v2152_v42  ;;  %v1651_v8 = vpop.f32.mrb[40].mxu0  ;;  %v3296_v34 = vld [vmem:[#allocation2] sm:$0x1] }
 0x147   :  { %v4547_v16 = vpack.c.bf16 %v2169_v49, %v2153_v39  ;;  %v2123_v13 = vmul.f32 %v1651_v8, %v6032_v36  ;;  %v1653_v63 = vpop.f32.mrb[41].mxu0  ;;  %3299 = vperm.xlu0 %4730, %v3296_v34   ;;  %v6909_v39 = vmov 0.0  }
 0x148   :  { %v4545_v30 = vpack.c.bf16 %v2170_v29, %v2154_v26  ;;  %v1740_v10 = vpop.f32.mrb[40].mxu1  ;;  %v2124_v17 = vmul.f32 %v1653_v63, %v6036_v38  ;;  %4538 = vmatprep.subr.bf16.mxu0 %v4537_v7 }
 0x149   :  { %v2125_v31 = vmul.f32 %v1740_v10, %v6034_v37  ;;  %v1742_v3 = vpop.f32.mrb[41].mxu1  ;;  %4540 = vmatpush1.bf16.msra.mxu0 %v4539_v27 }
 0x14a   :  { %v2126_v32 = vmul.f32 %v1742_v3, %v6038_v9  ;;  %4546 = vmatprep.subr.bf16.mxu1 %v4545_v30  ;;  %v1657_v36 = vpop.f32.mrb[42].mxu0 }
 0x14b   :  { %4548 = vmatpush1.bf16.msra.mxu1 %v4547_v16  ;;  %v2139_v28 = vmul.f32 %v1657_v36, %v6040_v40  ;;  %v1659_v60 = vpop.f32.mrb[43].mxu0  ;;  %v6189_v40 = vld [vmem:[%s6674_s2 + $0x8] sm:$0xff] }
 0x14c   :  { %v1746_v37 = vpop.f32.mrb[42].mxu1  ;;  %v2140_v25 = vmul.f32 %v1659_v60, %v6044_v41  ;;  %4333 = vmatmul.mubr.msk.f32.vlgmr.msra.gmra.mrb[64].mxu0 %vm6907_vm10, %v6175_v33  ;;  %vm6929_vm10 = vmmov %vm6879_vm0 }
 0x14d   :  { %v2141_v38 = vmul.f32 %v1746_v37, %v6042_v11  ;;  %v1748_v9 = vpop.f32.mrb[43].mxu1  ;;  %v4551_v35 = vpack.c.bf16 %v2139_v28, %v2123_v13  ;;  %2333 = vmatprep.mubr.f32.mxu0 %v6909_v39 }
 0x14e   :  { %v2142_v6 = vmul.f32 %v1748_v9, %v6046_v43  ;;  %4341 = vmatmul.mubr.msk.f32.vlgmr.msra.gmra.mrb[64].mxu1 %vm6908_vm5, %v6175_v33  ;;  %v4549_v42 = vpack.c.bf16 %v2140_v25, %v2124_v17  ;;  %v1663_v41 = vpop.f32.mrb[44].mxu0  ;;  %vm6931_vm5 = vmmov %vm6879_vm0 }
 0x14f   :  { %v4559_v11 = vpack.c.bf16 %v2141_v38, %v2125_v31  ;;  %2446 = vmatprep.mubr.f32.mxu1 %v6909_v39  ;;  %v2155_v26 = vmul.f32 %v1663_v41, %v6048_v15  ;;  %v1665_v43 = vpop.f32.mrb[45].mxu0  ;;  %v6203_v15 = vld [vmem:[%s6674_s2 + $0x10] sm:$0xff] }
 0x150   :  { %v4557_v2 = vpack.c.bf16 %v2142_v6, %v2126_v32  ;;  %v1752_v21 = vpop.f32.mrb[44].mxu1  ;;  %v2156_v24 = vmul.f32 %v1665_v43, %v6052_v45  ;;  %4334 = vmatmul.mubr.msk.f32.gmra.mrb[66].mxu0 %vm6910_vm13, %v6189_v40  ;;  %4550 = vmatprep.subr.bf16.mxu0 %v4549_v42  ;;  %vm6935_vm13 = vmmov %vm6879_vm0 }
 0x151   :  { %v2157_v23 = vmul.f32 %v1752_v21, %v6050_v44  ;;  %v1754_v5 = vpop.f32.mrb[45].mxu1  ;;  %4552 = vmatpush1.bf16.msra.mxu0 %v4551_v35  ;;  %2339 = vmatprep.mubr.f32.mxu0 %v6909_v39 }
 0x152   :  { %v2158_v49 = vmul.f32 %v1754_v5, %v6054_v46  ;;  %4342 = vmatmul.mubr.msk.f32.gmra.mrb[66].mxu1 %vm6879_vm0, %v6189_v40  ;;  %4558 = vmatprep.subr.bf16.mxu1 %v4557_v2  ;;  %v1669_v44 = vpop.f32.mrb[46].mxu0 }
 0x153   :  { %4560 = vmatpush1.bf16.msra.mxu1 %v4559_v11  ;;  %v2171_v45 = vmul.f32 %v1669_v44, %v6056_v47  ;;  %v1671_v22 = vpop.f32.mrb[47].mxu0  ;;  %2452 = vmatprep.mubr.f32.mxu1 %v6909_v39  ;;  %v6219_v47 = vld [vmem:[%s6674_s2 + $0x18] sm:$0xff] }
 0x154   :  { %v1758_v20 = vpop.f32.mrb[46].mxu1  ;;  %v2172_v27 = vmul.f32 %v1671_v22, %v6060_v50  ;;  %4335 = vmatmul.mubr.msk.f32.gmra.mrb[68].mxu0 %vm6911_vm11, %v6203_v15  ;;  %vm6940_vm11 = vmmov %vm6879_vm0 }
 0x155   :  { %v2173_v46 = vmul.f32 %v1758_v20, %v6058_v48  ;;  %v1760_v29 = vpop.f32.mrb[47].mxu1  ;;  %v4555_v16 = vpack.c.bf16 %v2171_v45, %v2155_v26  ;;  %2345 = vmatprep.mubr.f32.mxu0 %v6909_v39  ;;  %v6921_v20 = vld [vmem:[#allocation8_spill] sm:$0xff] }
 0x156   :  { %v2174_v7 = vmul.f32 %v1760_v29, %v6062_v51  ;;  %4343 = vmatmul.mubr.msk.f32.gmra.mrb[68].mxu1 %vm6912_vm8, %v6203_v15  ;;  %v4553_v8 = vpack.c.bf16 %v2172_v27, %v2156_v24  ;;  %v1829_v50 = vpop.f32.mrb[48].mxu0  ;;  %vm6942_vm8 = vmmov %vm6879_vm0 }
 0x157   :  { %v4563_v48 = vpack.c.bf16 %v2173_v46, %v2157_v23  ;;  %2458 = vmatprep.mubr.f32.mxu1 %v6909_v39  ;;  %v6223_v13 = vmul.f32 %v1829_v50, %v6064_v52  ;;  %v1831_v10 = vpop.f32.mrb[49].mxu0  ;;  %v6237_v52 = vld [vmem:[%s6674_s2 + $0x20] sm:$0xff]  ;;  %v6922_v46 = vld [vmem:[#allocation9_spill] sm:$0xff] }
 0x158   :  { %v4561_v30 = vpack.c.bf16 %v2174_v7, %v2158_v49  ;;  %v1918_v51 = vpop.f32.mrb[48].mxu1  ;;  %v2128_v31 = vmul.f32 %v1831_v10, %v6068_v19  ;;  %4336 = vmatmul.mubr.msk.f32.gmra.mrb[70].mxu0 %vm6913_vm15, %v6219_v47  ;;  %4554 = vmatprep.subr.bf16.mxu0 %v4553_v8  ;;  %vm6943_vm15 = vmmov %vm6879_vm0 }
 0x159   :  { %v6226_v63 = vmul.f32 %v1918_v51, %v6066_v18  ;;  %v1920_v17 = vpop.f32.mrb[49].mxu1  ;;  %4556 = vmatpush1.bf16.msra.mxu0 %v4555_v16  ;;  %2351 = vmatprep.mubr.f32.mxu0 %v6909_v39  ;;  %v6924_v16 = vld [vmem:[#allocation10_spill] sm:$0xff]  ;;  %v6927_v51 = vld [vmem:[#allocation12_spill] sm:$0xff] }
 0x15a   :  { %v2130_v3 = vmul.f32 %v1920_v17, %v6070_v53  ;;  %4344 = vmatmul.mubr.msk.f32.gmra.mrb[70].mxu1 %vm6914_vm1, %v6219_v47  ;;  %4562 = vmatprep.subr.bf16.mxu1 %v4561_v30  ;;  %v1835_v18 = vpop.f32.mrb[50].mxu0  ;;  %vm6944_vm1 = vmmov %vm6879_vm0 }
 0x15b   :  { %4564 = vmatpush1.bf16.msra.mxu1 %v4563_v48  ;;  %v6240_v19 = vmul.f32 %v1835_v18, %v6072_v54  ;;  %v1837_v34 = vpop.f32.mrb[51].mxu0  ;;  %2464 = vmatprep.mubr.f32.mxu1 %v6909_v39  ;;  %v6926_v48 = vld [vmem:[#allocation11_spill] sm:$0xff]  ;;  %v6930_v18 = vld [vmem:[#allocation14_spill] sm:$0xff] }
 0x15c   :  { %v1924_v32 = vpop.f32.mrb[50].mxu1  ;;  %v2144_v36 = vmul.f32 %v1837_v34, %v6076_v56  ;;  %4337 = vmatmul.mubr.msk.f32.gmra.mrb[72].mxu0 %vm6915_vm14, %v6237_v52  ;;  %vm6945_vm14 = vmmov %vm6879_vm0 }
 0x15d   :  { %v6245_v53 = vmul.f32 %v1924_v32, %v6074_v55  ;;  %v1926_v28 = vpop.f32.mrb[51].mxu1  ;;  %v4567_v37 = vpack.c.bf16 %v6240_v19, %v6223_v13  ;;  %2357 = vmatprep.mubr.f32.mxu0 %v6909_v39  ;;  %v6259_v55 = vld [vmem:[%s6674_s2 + $0x28] sm:$0xff] }
 0x15e   :  { %v2146_v54 = vmul.f32 %v1926_v28, %v6078_v57  ;;  %4345 = vmatmul.mubr.msk.f32.gmra.mrb[72].mxu1 %vm6916_vm4, %v6237_v52  ;;  %v4565_v60 = vpack.c.bf16 %v2144_v36, %v2128_v31  ;;  %v1841_v38 = vpop.f32.mrb[52].mxu0  ;;  %v6934_v13 = vld [vmem:[#allocation17_spill] sm:$0xff]  ;;  %vm6946_vm4 = vmmov %vm6879_vm0 }
 0x15f   :  { %v4575_v56 = vpack.c.bf16 %v6245_v53, %v6226_v63  ;;  %2470 = vmatprep.mubr.f32.mxu1 %v6909_v39  ;;  %v6265_v57 = vmul.f32 %v1841_v38, %v6080_v58  ;;  %v1843_v35 = vpop.f32.mrb[53].mxu0  ;;  %v6279_v58 = vld [vmem:[%s6674_s2 + $0x30] sm:$0xff] }
 0x160   :  { %v4573_v25 = vpack.c.bf16 %v2146_v54, %v2130_v3  ;;  %v1930_v9 = vpop.f32.mrb[52].mxu1  ;;  %v2160_v11 = vmul.f32 %v1843_v35, %v6084_v61  ;;  %4338 = vmatmul.mubr.msk.f32.gmra.mrb[74].mxu0 %vm6917_vm9, %v6259_v55  ;;  %4566 = vmatprep.subr.bf16.mxu0 %v4565_v60  ;;  %v6928_v63 = vld [vmem:[#allocation13_spill] sm:$0xff]  ;;  %v6932_v54 = vld [vmem:[#allocation15_spill] sm:$0xff]  ;;  %vm6947_vm9 = vmmov %vm6879_vm0 }
 0x161   :  { %v6268_v6 = vmul.f32 %v1930_v9, %v6082_v59  ;;  %v1932_v42 = vpop.f32.mrb[53].mxu1  ;;  %2363 = vmatprep.mubr.f32.mxu0 %v6909_v39 }
 0x162   :  { %v2162_v41 = vmul.f32 %v1932_v42, %v6086_v62  ;;  %4346 = vmatmul.mubr.msk.f32.gmra.mrb[74].mxu1 %vm6918_vm2, %v6259_v55  ;;  %4574 = vmatprep.subr.bf16.mxu1 %v4573_v25  ;;  %v1847_v59 = vpop.f32.mrb[54].mxu0  ;;  %vm6948_vm2 = vmmov %vm6879_vm0 }
 0x163   :  { %2476 = vmatprep.mubr.f32.mxu1 %v6909_v39  ;;  %v2175_v61 = vmul.f32 %v1847_v59, %v6091_v0  ;;  %v1849_v26 = vpop.f32.mrb[55].mxu0  ;;  %v6296_v0 = vld [vmem:[%s6674_s2 + $0x38] sm:$0xff] }
 0x164   :  { %v1936_v2 = vpop.f32.mrb[54].mxu1  ;;  %v2176_v21 = vmul.f32 %v1849_v26, %v6095_v4  ;;  %4339 = vmatmul.mubr.msk.f32.gmra.mrb[76].mxu0 %vm6919_vm6, %v6279_v58  ;;  %v6939_v26 = vld [vmem:[#allocation21_spill] sm:$0xff]  ;;  %vm6949_vm6 = vmmov %vm6879_vm0 }
 0x165   :  { %v2177_v62 = vmul.f32 %v1936_v2, %v6093_v1  ;;  %v1938_v43 = vpop.f32.mrb[55].mxu1  ;;  %v4571_v23 = vpack.c.bf16 %v2175_v61, %v6265_v57  ;;  %2369 = vmatprep.mubr.f32.mxu0 %v6909_v39  ;;  %v6933_v57 = vld [vmem:[#allocation16_spill] sm:$0xff] }
 0x166   :  { %v2178_v24 = vmul.f32 %v1938_v43, %v6097_v12  ;;  %4347 = vmatmul.mubr.msk.f32.gmra.mrb[76].mxu1 %vm6920_vm12, %v6279_v58  ;;  %v4569_v4 = vpack.c.bf16 %v2176_v21, %v2160_v11  ;;  %v2007_v5 = vpop.f32.mrb[56].mxu0  ;;  %v6937_v11 = vld [vmem:[#allocation19_spill] sm:$0xff]  ;;  %v6938_v61 = vld [vmem:[#allocation20_spill] sm:$0xff]  ;;  %vm6950_vm12 = vmmov %vm6879_vm0 }
 0x167   :  { %v4579_v1 = vpack.c.bf16 %v2177_v62, %v6268_v6  ;;  %2482 = vmatprep.mubr.f32.mxu1 %v6909_v39  ;;  %v6301_v44 = vmul.f32 %v2007_v5, %v6102_v14  ;;  %v2009_v45 = vpop.f32.mrb[57].mxu0 }
 0x168   :  { %v4577_v49 = vpack.c.bf16 %v2178_v24, %v2162_v41  ;;  %v2096_v12 = vpop.f32.mrb[56].mxu1  ;;  %v2132_v27 = vmul.f32 %v2009_v45, %v6922_v46  ;;  %4340 = vmatmul.mubr.msk.f32.gmra.mrb[78].mxu0 %vm6923_vm3, %v6296_v0  ;;  %vm6951_vm3 = vmmov %vm6879_vm0 }
 0x169   :  { %v6304_v22 = vmul.f32 %v2096_v12, %v6921_v20  ;;  %v2098_v29 = vpop.f32.mrb[57].mxu1  ;;  %2553 = vmatprep.mubr.f32.mxu0 %v6909_v39 }
 0x16a   :  { %v2134_v7 = vmul.f32 %v2098_v29, %v6924_v16  ;;  %4348 = vmatmul.mubr.msk.f32.gmra.mrb[78].mxu1 %vm6925_vm7, %v6296_v0  ;;  %v2013_v14 = vpop.f32.mrb[58].mxu0  ;;  %vm6952_vm7 = vmmov %vm6879_vm0 }
 0x16b   :  { %2666 = vmatprep.mubr.f32.mxu1 %v6909_v39  ;;  %v6315_v8 = vmul.f32 %v2013_v14, %v6926_v48  ;;  %v2015_v30 = vpop.f32.mrb[59].mxu0 }
 0x16c   :  { %v2102_v50 = vpop.f32.mrb[58].mxu1  ;;  %v2148_v31 = vmul.f32 %v2015_v30, %v6928_v63  ;;  %4349 = vmatmul.mubr.msk.f32.vlgmr.msra.gmra.mrb[80].mxu0 %vm6929_vm10, %v6175_v33  ;;  %vm6953_vm10 = vmmov %vm6879_vm0 }
 0x16d   :  { %v6318_v10 = vmul.f32 %v2102_v50, %v6927_v51  ;;  %v2104_v17 = vpop.f32.mrb[59].mxu1  ;;  %v4583_v3 = vpack.c.bf16 %v6315_v8, %v6301_v44  ;;  %4568 = vmatpush1.bf16.msra.mxu0 %v4567_v37  ;;  %2559 = vmatprep.mubr.f32.mxu0 %v6909_v39 }
 0x16e   :  { %v2150_v32 = vmul.f32 %v2104_v17, %v6930_v18  ;;  %4357 = vmatmul.mubr.msk.f32.vlgmr.msra.gmra.mrb[80].mxu1 %vm6931_vm5, %v6175_v33  ;;  %v4581_v53 = vpack.c.bf16 %v2148_v31, %v2132_v27  ;;  %4570 = vmatprep.subr.bf16.mxu0 %v4569_v4  ;;  %v2019_v36 = vpop.f32.mrb[60].mxu0  ;;  %vm6954_vm5 = vmmov %vm6879_vm0 }
 0x16f   :  { %v4591_v34 = vpack.c.bf16 %v6318_v10, %v6304_v22  ;;  %4576 = vmatpush1.bf16.msra.mxu1 %v4575_v56  ;;  %v6334_v60 = vmul.f32 %v2019_v36, %v6932_v54  ;;  %v2021_v25 = vpop.f32.mrb[61].mxu0  ;;  %2672 = vmatprep.mubr.f32.mxu1 %v6909_v39  ;;  %v6936_v56 = vld [vmem:[#allocation18_spill] sm:$0xff] }
 0x170   :  { %v4589_v28 = vpack.c.bf16 %v2150_v32, %v2134_v7  ;;  %4578 = vmatprep.subr.bf16.mxu1 %v4577_v49  ;;  %v2108_v38 = vpop.f32.mrb[60].mxu1  ;;  %v2164_v19 = vmul.f32 %v2021_v25, %v6934_v13  ;;  %4350 = vmatmul.mubr.msk.f32.gmra.mrb[82].mxu0 %vm6935_vm13, %v6189_v40  ;;  %vm6955_vm13 = vmmov %vm6879_vm0 }
 0x171   :  { %v2165_v9 = vmul.f32 %v2108_v38, %v6933_v57  ;;  %v2110_v37 = vpop.f32.mrb[61].mxu1  ;;  %4572 = vmatpush1.bf16.msra.mxu0 %v4571_v23  ;;  %2565 = vmatprep.mubr.f32.mxu0 %v6909_v39  ;;  %v6941_v23 = vld [vmem:[#allocation22_spill] sm:$0xff] }
 0x172   :  { %v2166_v35 = vmul.f32 %v2110_v37, %v6936_v56  ;;  %4358 = vmatmul.mubr.msk.f32.gmra.mrb[82].mxu1 %vm6879_vm0, %v6189_v40  ;;  %4582 = vmatprep.subr.bf16.mxu0 %v4581_v53  ;;  %v2025_v6 = vpop.f32.mrb[62].mxu0 }
 0x173   :  { %4580 = vmatpush1.bf16.msra.mxu1 %v4579_v1  ;;  %v2179_v42 = vmul.f32 %v2025_v6, %v6937_v11  ;;  %v2027_v59 = vpop.f32.mrb[63].mxu0  ;;  %2678 = vmatprep.mubr.f32.mxu1 %v6909_v39 }
 0x174   :  { %4590 = vmatprep.subr.bf16.mxu1 %v4589_v28  ;;  %v2114_v41 = vpop.f32.mrb[62].mxu1  ;;  %v2180_v62 = vmul.f32 %v2027_v59, %v6939_v26  ;;  %4351 = vmatmul.mubr.msk.f32.gmra.mrb[84].mxu0 %vm6940_vm11, %v6203_v15  ;;  %vm6956_vm11 = vmmov %vm6879_vm0 }
 0x175   :  { %v2181_v2 = vmul.f32 %v2114_v41, %v6938_v61  ;;  %v2116_v21 = vpop.f32.mrb[63].mxu1  ;;  %v4587_v43 = vpack.c.bf16 %v2179_v42, %v6334_v60  ;;  %2571 = vmatprep.mubr.f32.mxu0 %v6909_v39 }
 0x176   :  { %v2182_v24 = vmul.f32 %v2116_v21, %v6941_v23  ;;  %4359 = vmatmul.mubr.msk.f32.gmra.mrb[84].mxu1 %vm6942_vm8, %v6203_v15  ;;  %v4585_v4 = vpack.c.bf16 %v2180_v62, %v2164_v19  ;;  %vm6957_vm8 = vmmov %vm6879_vm0 }
 0x177   :  { %v4595_v1 = vpack.c.bf16 %v2181_v2, %v2165_v9  ;;  %2684 = vmatprep.mubr.f32.mxu1 %v6909_v39 }
 0x178   :  { %v4593_v5 = vpack.c.bf16 %v2182_v24, %v2166_v35  ;;  %4352 = vmatmul.mubr.msk.f32.gmra.mrb[86].mxu0 %vm6943_vm15, %v6219_v47  ;;  %vm6958_vm15 = vmmov %vm6879_vm0 }
 0x179   :  { %2577 = vmatprep.mubr.f32.mxu0 %v6909_v39 }
 0x17a   :  { %4360 = vmatmul.mubr.msk.f32.gmra.mrb[86].mxu1 %vm6944_vm1, %v6219_v47  ;;  %vm6959_vm1 = vmmov %vm6879_vm0 }
 0x17b   :  { %2690 = vmatprep.mubr.f32.mxu1 %v6909_v39 }
 0x17c   :  { %4353 = vmatmul.mubr.msk.f32.gmra.mrb[88].mxu0 %vm6945_vm14, %v6237_v52  ;;  %vm6960_vm14 = vmmov %vm6879_vm0 }
 0x17d   :  { %2583 = vmatprep.mubr.f32.mxu0 %v6909_v39 }
 0x17e   :  { %4361 = vmatmul.mubr.msk.f32.gmra.mrb[88].mxu1 %vm6946_vm4, %v6237_v52  ;;  %vm6961_vm4 = vmmov %vm6879_vm0 }
 0x17f   :  { %2696 = vmatprep.mubr.f32.mxu1 %v6909_v39 }
 0x180   :  { %4354 = vmatmul.mubr.msk.f32.gmra.mrb[90].mxu0 %vm6947_vm9, %v6259_v55  ;;  %vm6962_vm9 = vmmov %vm6879_vm0 }
 0x181   :  { %2589 = vmatprep.mubr.f32.mxu0 %v6909_v39 }
 0x182   :  { %4362 = vmatmul.mubr.msk.f32.gmra.mrb[90].mxu1 %vm6948_vm2, %v6259_v55  ;;  %vm6963_vm2 = vmmov %vm6879_vm0 }
 0x183   :  { %2702 = vmatprep.mubr.f32.mxu1 %v6909_v39 }
 0x184   :  { %4355 = vmatmul.mubr.msk.f32.gmra.mrb[92].mxu0 %vm6949_vm6, %v6279_v58  ;;  %vm6964_vm6 = vmmov %vm6879_vm0 }
 0x185   :  { %2595 = vmatprep.mubr.f32.mxu0 %v6909_v39 }
 0x186   :  { %4363 = vmatmul.mubr.msk.f32.gmra.mrb[92].mxu1 %vm6950_vm12, %v6279_v58  ;;  %vm6965_vm12 = vmmov %vm6879_vm0 }
 0x187   :  { %2708 = vmatprep.mubr.f32.mxu1 %v6909_v39 }
 0x188   :  { %4356 = vmatmul.mubr.msk.f32.gmra.mrb[94].mxu0 %vm6951_vm3, %v6296_v0  ;;  %vm6966_vm3 = vmmov %vm6879_vm0 }
 0x189   :  { %2779 = vmatprep.mubr.f32.mxu0 %v6909_v39 }
 0x18a   :  { %4364 = vmatmul.mubr.msk.f32.gmra.mrb[94].mxu1 %vm6952_vm7, %v6296_v0  ;;  %vm6967_vm7 = vmmov %vm6879_vm0 }
 0x18b   :  { %2892 = vmatprep.mubr.f32.mxu1 %v6909_v39 }
 0x18c   :  { %4365 = vmatmul.mubr.msk.f32.vlgmr.msra.gmra.mrb[96].mxu0 %vm6953_vm10, %v6175_v33  ;;  %vm6968_vm10 = vmmov %vm6879_vm0 }
 0x18d   :  { %4584 = vmatpush1.bf16.msra.mxu0 %v4583_v3  ;;  %2785 = vmatprep.mubr.f32.mxu0 %v6909_v39 }
 0x18e   :  { %4373 = vmatmul.mubr.msk.f32.vlgmr.msra.gmra.mrb[96].mxu1 %vm6954_vm5, %v6175_v33  ;;  %4586 = vmatprep.subr.bf16.mxu0 %v4585_v4  ;;  %vm6969_vm5 = vmmov %vm6879_vm0 }
 0x18f   :  { %4592 = vmatpush1.bf16.msra.mxu1 %v4591_v34  ;;  %2898 = vmatprep.mubr.f32.mxu1 %v6909_v39 }
 0x190   :  { %4594 = vmatprep.subr.bf16.mxu1 %v4593_v5  ;;  %4366 = vmatmul.mubr.msk.f32.gmra.mrb[98].mxu0 %vm6955_vm13, %v6189_v40  ;;  %vm6970_vm13 = vmmov %vm6879_vm0 }
 0x191   :  { %4588 = vmatpush1.bf16.msra.mxu0 %v4587_v43  ;;  %2791 = vmatprep.mubr.f32.mxu0 %v6909_v39 }
 0x192   :  { %4374 = vmatmul.mubr.msk.f32.gmra.mrb[98].mxu1 %vm6879_vm0, %v6189_v40 }
 0x193   :  { %4596 = vmatpush1.bf16.msra.mxu1 %v4595_v1  ;;  %2904 = vmatprep.mubr.f32.mxu1 %v6909_v39 }
 0x194   :  { %4367 = vmatmul.mubr.msk.f32.gmra.mrb[100].mxu0 %vm6956_vm11, %v6203_v15  ;;  %vm6971_vm11 = vmmov %vm6879_vm0 }
 0x195   :  { %2797 = vmatprep.mubr.f32.mxu0 %v6909_v39 }
 0x196   :  { %4375 = vmatmul.mubr.msk.f32.gmra.mrb[100].mxu1 %vm6957_vm8, %v6203_v15  ;;  %vm6972_vm8 = vmmov %vm6879_vm0 }
 0x197   :  { %2910 = vmatprep.mubr.f32.mxu1 %v6909_v39 }
 0x198   :  { %4368 = vmatmul.mubr.msk.f32.gmra.mrb[102].mxu0 %vm6958_vm15, %v6219_v47  ;;  %vm6973_vm15 = vmmov %vm6879_vm0 }
 0x199   :  { %2803 = vmatprep.mubr.f32.mxu0 %v6909_v39 }
 0x19a   :  { %4376 = vmatmul.mubr.msk.f32.gmra.mrb[102].mxu1 %vm6959_vm1, %v6219_v47  ;;  %vm6974_vm1 = vmmov %vm6879_vm0 }
 0x19b   :  { %2916 = vmatprep.mubr.f32.mxu1 %v6909_v39 }
 0x19c   :  { %4369 = vmatmul.mubr.msk.f32.gmra.mrb[104].mxu0 %vm6960_vm14, %v6237_v52  ;;  %vm6975_vm14 = vmmov %vm6879_vm0 }
 0x19d   :  { %2809 = vmatprep.mubr.f32.mxu0 %v6909_v39 }
 0x19e   :  { %4377 = vmatmul.mubr.msk.f32.gmra.mrb[104].mxu1 %vm6961_vm4, %v6237_v52  ;;  %vm6976_vm4 = vmmov %vm6879_vm0 }
 0x19f   :  { %2922 = vmatprep.mubr.f32.mxu1 %v6909_v39 }
 0x1a0   :  { %4370 = vmatmul.mubr.msk.f32.gmra.mrb[106].mxu0 %vm6962_vm9, %v6259_v55  ;;  %vm6977_vm9 = vmmov %vm6879_vm0 }
 0x1a1   :  { %2815 = vmatprep.mubr.f32.mxu0 %v6909_v39 }
 0x1a2   :  { %4378 = vmatmul.mubr.msk.f32.gmra.mrb[106].mxu1 %vm6963_vm2, %v6259_v55  ;;  %vm6978_vm2 = vmmov %vm6879_vm0 }
 0x1a3   :  { %2928 = vmatprep.mubr.f32.mxu1 %v6909_v39 }
 0x1a4   :  { %4371 = vmatmul.mubr.msk.f32.gmra.mrb[108].mxu0 %vm6964_vm6, %v6279_v58  ;;  %vm6979_vm6 = vmmov %vm6879_vm0 }
 0x1a5   :  { %2821 = vmatprep.mubr.f32.mxu0 %v6909_v39 }
 0x1a6   :  { %4379 = vmatmul.mubr.msk.f32.gmra.mrb[108].mxu1 %vm6965_vm12, %v6279_v58  ;;  %vm6980_vm12 = vmmov %vm6879_vm0 }
 0x1a7   :  { %2934 = vmatprep.mubr.f32.mxu1 %v6909_v39 }
 0x1a8   :  { %4372 = vmatmul.mubr.msk.f32.gmra.mrb[110].mxu0 %vm6966_vm3, %v6296_v0  ;;  %vm6981_vm3 = vmmov %vm6879_vm0 }
 0x1a9   :  { %3005 = vmatprep.mubr.f32.mxu0 %v6909_v39 }
 0x1aa   :  { %4380 = vmatmul.mubr.msk.f32.gmra.mrb[110].mxu1 %vm6967_vm7, %v6296_v0  ;;  %vm6982_vm7 = vmmov %vm6879_vm0 }
 0x1ab   :  { %3118 = vmatprep.mubr.f32.mxu1 %v6909_v39 }
 0x1ac   :  { %4381 = vmatmul.mubr.msk.f32.vlgmr.msra.gmra.mrb[112].mxu0 %vm6968_vm10, %v6175_v33  ;;  %vm3306_vm10 = vcmask 523264  }
 0x1ad   :  { %3011 = vmatprep.mubr.f32.mxu0 %v6909_v39 }
 0x1ae   :  { %4389 = vmatmul.mubr.msk.f32.vlgmr.msra.gmra.mrb[112].mxu1 %vm6969_vm5, %v6175_v33  ;;  %v6487_v33 = vpop.permute.xlu0 %2201 }
 0x1af   :  { %3124 = vmatprep.mubr.f32.mxu1 %v6909_v39 }
 0x1b0   :  { %4382 = vmatmul.mubr.msk.f32.gmra.mrb[114].mxu0 %vm6970_vm13, %v6189_v40 }
 0x1b1   :  { %3017 = vmatprep.mubr.f32.mxu0 %v6909_v39 }
 0x1b2   :  { %4390 = vmatmul.mubr.msk.f32.gmra.mrb[114].mxu1 %vm6879_vm0, %v6189_v40 }
 0x1b3   :  { %3130 = vmatprep.mubr.f32.mxu1 %v6909_v39 }
 0x1b4   :  { %4383 = vmatmul.mubr.msk.f32.gmra.mrb[116].mxu0 %vm6971_vm11, %v6203_v15 }
 0x1b5   :  { %3023 = vmatprep.mubr.f32.mxu0 %v6909_v39 }
 0x1b6   :  { %4391 = vmatmul.mubr.msk.f32.gmra.mrb[116].mxu1 %vm6972_vm8, %v6203_v15 }
 0x1b7   :  { %3136 = vmatprep.mubr.f32.mxu1 %v6909_v39 }
 0x1b8   :  { %4384 = vmatmul.mubr.msk.f32.gmra.mrb[118].mxu0 %vm6973_vm15, %v6219_v47 }
 0x1b9   :  { %3029 = vmatprep.mubr.f32.mxu0 %v6909_v39 }
 0x1ba   :  { %4392 = vmatmul.mubr.msk.f32.gmra.mrb[118].mxu1 %vm6974_vm1, %v6219_v47 }
 0x1bb   :  { %3142 = vmatprep.mubr.f32.mxu1 %v6909_v39 }
 0x1bc   :  { %4385 = vmatmul.mubr.msk.f32.gmra.mrb[120].mxu0 %vm6975_vm14, %v6237_v52 }
 0x1bd   :  { %3035 = vmatprep.mubr.f32.mxu0 %v6909_v39 }
 0x1be   :  { %4393 = vmatmul.mubr.msk.f32.gmra.mrb[120].mxu1 %vm6976_vm4, %v6237_v52 }
 0x1bf   :  { %3148 = vmatprep.mubr.f32.mxu1 %v6909_v39 }
 0x1c0   :  { %4386 = vmatmul.mubr.msk.f32.gmra.mrb[122].mxu0 %vm6977_vm9, %v6259_v55 }
 0x1c1   :  { %3041 = vmatprep.mubr.f32.mxu0 %v6909_v39 }
 0x1c2   :  { %4394 = vmatmul.mubr.msk.f32.gmra.mrb[122].mxu1 %vm6978_vm2, %v6259_v55  ;;  %v6489_v55 = vpop.permute.xlu0 %2206 }
 0x1c3   :  { %3154 = vmatprep.mubr.f32.mxu1 %v6909_v39 }
 0x1c4   :  { %4387 = vmatmul.mubr.msk.f32.gmra.mrb[124].mxu0 %vm6979_vm6, %v6279_v58 }
 0x1c5   :  { %3047 = vmatprep.mubr.f32.mxu0 %v6909_v39 }
 0x1c6   :  { %4395 = vmatmul.mubr.msk.f32.gmra.mrb[124].mxu1 %vm6980_vm12, %v6279_v58  ;;  %v6511_v26 = vpop.permute.xlu0 %2221 }
 0x1c7   :  { %3160 = vmatprep.mubr.f32.mxu1 %v6909_v39 }
 0x1c8   :  { %4388 = vmatmul.mubr.msk.f32.gmra.mrb[126].mxu0 %vm6981_vm3, %v6296_v0 }
 0x1c9   :  { %3374 = vmatprep.mubr.f32.mxu0 %v6909_v39 }
 0x1ca   :  { %4396 = vmatmul.mubr.msk.f32.gmra.mrb[126].mxu1 %vm6982_vm7, %v6296_v0  ;;  %v6494_v0 = vpop.permute.xlu1 %2211 }
 0x1cb   :  { %3445 = vmatprep.mubr.f32.mxu1 %v6909_v39 }
 0x1ce   :  { %v6501_v53 = vpop.permute.xlu1 %2216 }
 0x21f   :  { %v2329_v40 = vpop.f32.mrb[64].mxu0 }
 0x220   :  { %v2331_v47 = vpop.f32.mrb[65].mxu0  ;;  %v2330_v58 = vadd.f32 %v2329_v40, %v6487_v33  ;;  %v6513_v40 = vpop.permute.xlu1 %2226 }
 0x221   :  { %v2442_v15 = vpop.f32.mrb[64].mxu1  ;;  %v2332_v44 = vadd.f32 %v2331_v47, %v6487_v33 }
 0x222   :  { %v2444_v52 = vpop.f32.mrb[65].mxu1  ;;  %v2443_v49 = vadd.f32 %v2442_v15, %v6487_v33  ;;  %v3167_v7 = vmax.f32 %v2330_v58, 0.0 }
 0x223   :  { %v2335_v12 = vpop.f32.mrb[66].mxu0  ;;  %v2445_v45 = vadd.f32 %v2444_v52, %v6487_v33  ;;  %v3168_v50 = vmax.f32 %v2332_v44, 0.0 }
 0x224   :  { %v2337_v22 = vpop.f32.mrb[67].mxu0  ;;  %v2336_v46 = vadd.f32 %v2335_v12, %v6489_v55  ;;  %v3169_v8 = vmax.f32 %v2443_v49, 0.0 }
 0x225   :  { %v2448_v20 = vpop.f32.mrb[66].mxu1  ;;  %v2338_v27 = vadd.f32 %v2337_v22, %v6489_v55  ;;  %v3170_v63 = vmax.f32 %v2445_v45, 0.0 }
 0x226   :  { %v2450_v29 = vpop.f32.mrb[67].mxu1  ;;  %v2449_v16 = vadd.f32 %v2448_v20, %v6489_v55  ;;  %v3183_v48 = vmax.f32 %v2336_v46, 0.0 }
 0x227   :  { %v2451_v14 = vadd.f32 %v2450_v29, %v6489_v55  ;;  %v3184_v30 = vmax.f32 %v2338_v27, 0.0  ;;  %v2341_v51 = vpop.f32.mrb[68].mxu0 }
 0x228   :  { %v3185_v10 = vmax.f32 %v2449_v16, 0.0  ;;  %v2343_v3 = vpop.f32.mrb[69].mxu0  ;;  %v4599_v18 = vpack.c.bf16 %v3183_v48, %v3167_v7  ;;  %v2342_v54 = vadd.f32 %v2341_v51, %v6494_v0 }
 0x229   :  { %v3186_v31 = vmax.f32 %v2451_v14, 0.0  ;;  %v2454_v17 = vpop.f32.mrb[68].mxu1  ;;  %v4597_v32 = vpack.c.bf16 %v3184_v30, %v3168_v50  ;;  %v2344_v38 = vadd.f32 %v2343_v3, %v6494_v0  ;;  %v6523_v30 = vpop.permute.xlu0 %2231 }
 0x22a   :  { %v2456_v34 = vpop.f32.mrb[69].mxu1  ;;  %v4615_v36 = vpack.c.bf16 %v3185_v10, %v3169_v8  ;;  %v2455_v60 = vadd.f32 %v2454_v17, %v6494_v0  ;;  %v3199_v6 = vmax.f32 %v2342_v54, 0.0 }
 0x22b   :  { %v4613_v28 = vpack.c.bf16 %v3186_v31, %v3170_v63  ;;  %v2347_v25 = vpop.f32.mrb[70].mxu0  ;;  %4598 = vmatprep.subr.bf16.mxu0 %v4597_v32  ;;  %v2457_v57 = vadd.f32 %v2456_v34, %v6494_v0  ;;  %v3200_v59 = vmax.f32 %v2344_v38, 0.0 }
 0x22c   :  { %v2349_v13 = vpop.f32.mrb[71].mxu0  ;;  %4600 = vmatpush1.bf16.msra.mxu0 %v4599_v18  ;;  %v2348_v19 = vadd.f32 %v2347_v25, %v6501_v53  ;;  %v3201_v41 = vmax.f32 %v2455_v60, 0.0 }
 0x22d   :  { %v2460_v9 = vpop.f32.mrb[70].mxu1  ;;  %4614 = vmatprep.subr.bf16.mxu1 %v4613_v28  ;;  %v2350_v37 = vadd.f32 %v2349_v13, %v6501_v53  ;;  %v3202_v21 = vmax.f32 %v2457_v57, 0.0 }
 0x22e   :  { %v2462_v56 = vpop.f32.mrb[71].mxu1  ;;  %4616 = vmatpush1.bf16.msra.mxu1 %v4615_v36  ;;  %v2461_v35 = vadd.f32 %v2460_v9, %v6501_v53  ;;  %v3215_v42 = vmax.f32 %v2348_v19, 0.0  ;;  %v6525_v36 = vpop.permute.xlu1 %2236 }
 0x22f   :  { %v2463_v11 = vadd.f32 %v2462_v56, %v6501_v53  ;;  %v3216_v61 = vmax.f32 %v2350_v37, 0.0  ;;  %v2353_v2 = vpop.f32.mrb[72].mxu0 }
 0x230   :  { %v3217_v62 = vmax.f32 %v2461_v35, 0.0  ;;  %v2355_v24 = vpop.f32.mrb[73].mxu0  ;;  %v4603_v1 = vpack.c.bf16 %v3215_v42, %v3199_v6  ;;  %v2354_v52 = vadd.f32 %v2353_v2, %v6511_v26 }
 0x231   :  { %v3218_v43 = vmax.f32 %v2463_v11, 0.0  ;;  %v2466_v23 = vpop.f32.mrb[72].mxu1  ;;  %v4601_v4 = vpack.c.bf16 %v3216_v61, %v3200_v59  ;;  %v2356_v49 = vadd.f32 %v2355_v24, %v6511_v26 }
 0x232   :  { %v2468_v5 = vpop.f32.mrb[73].mxu1  ;;  %v4619_v15 = vpack.c.bf16 %v3217_v62, %v3201_v41  ;;  %v2467_v44 = vadd.f32 %v2466_v23, %v6511_v26  ;;  %v3231_v7 = vmax.f32 %v2354_v52, 0.0 }
 0x233   :  { %v4617_v47 = vpack.c.bf16 %v3218_v43, %v3202_v21  ;;  %v2359_v58 = vpop.f32.mrb[74].mxu0  ;;  %4602 = vmatprep.subr.bf16.mxu0 %v4601_v4  ;;  %v2469_v20 = vadd.f32 %v2468_v5, %v6511_v26  ;;  %v3232_v48 = vmax.f32 %v2356_v49, 0.0 }
 0x234   :  { %v2361_v45 = vpop.f32.mrb[75].mxu0  ;;  %4604 = vmatpush1.bf16.msra.mxu0 %v4603_v1  ;;  %v2360_v22 = vadd.f32 %v2359_v58, %v6513_v40  ;;  %v3233_v51 = vmax.f32 %v2467_v44, 0.0 }
 0x235   :  { %v2472_v12 = vpop.f32.mrb[74].mxu1  ;;  %4618 = vmatprep.subr.bf16.mxu1 %v4617_v47  ;;  %v2362_v46 = vadd.f32 %v2361_v45, %v6513_v40  ;;  %v3234_v63 = vmax.f32 %v2469_v20, 0.0 }
 0x236   :  { %v2474_v27 = vpop.f32.mrb[75].mxu1  ;;  %4620 = vmatpush1.bf16.msra.mxu1 %v4619_v15  ;;  %v2473_v29 = vadd.f32 %v2472_v12, %v6513_v40  ;;  %v3247_v14 = vmax.f32 %v2360_v22, 0.0 }
 0x237   :  { %v2475_v16 = vadd.f32 %v2474_v27, %v6513_v40  ;;  %v3248_v8 = vmax.f32 %v2362_v46, 0.0  ;;  %v2365_v50 = vpop.f32.mrb[76].mxu0  ;;  %v6543_v27 = vld [vmem:[%s6676_s4] sm:$0x1]  ;;  %s4760_s4 = smov [#allocation3]  }
 0x238   :  { %v3249_v10 = vmax.f32 %v2473_v29, 0.0  ;;  %v2367_v3 = vpop.f32.mrb[77].mxu0  ;;  %v4607_v18 = vpack.c.bf16 %v3247_v14, %v3231_v7  ;;  %v2366_v60 = vadd.f32 %v2365_v50, %v6523_v30  ;;  %s4002_s17 = sshll.u32 %s4760_s4, 4  ;;  %s4003_s17 = int_to_ptr.vmem [resolvable:$true] %s4002_s17 }
 0x239   :  { %v3250_v31 = vmax.f32 %v2475_v16, 0.0  ;;  %v2478_v17 = vpop.f32.mrb[76].mxu1  ;;  %v4605_v32 = vpack.c.bf16 %v3248_v8, %v3232_v48  ;;  %v2368_v25 = vadd.f32 %v2367_v3, %v6523_v30  ;;  %s4732_s18 = scalar_lea.vmem %s4003_s17, 256  ;;  %p4737_p1 = scmp.lt.s32.totalorder %s4003_s17, %s4003_s17 }
 0x23a   :  { %v2480_v34 = vpop.f32.mrb[77].mxu1  ;;  %v4623_v28 = vpack.c.bf16 %v3249_v10, %v3233_v51  ;;  %v2479_v57 = vadd.f32 %v2478_v17, %v6523_v30  ;;  %v3263_v42 = vmax.f32 %v2366_v60, 0.0  ;;  %p4733_p0 = scmp.ne.s32.totalorder %s4003_s17, %s4732_s18  ;;  %p4738_p2 = scmp.lt.s32.totalorder %s4732_s18, %s4732_s18 }
 0x23b   :  { %v4621_v54 = vpack.c.bf16 %v3250_v31, %v3234_v63  ;;  %v2371_v38 = vpop.f32.mrb[78].mxu0  ;;  %4606 = vmatprep.subr.bf16.mxu0 %v4605_v32  ;;  %v2481_v19 = vadd.f32 %v2480_v34, %v6523_v30  ;;  %v3264_v59 = vmax.f32 %v2368_v25, 0.0 }
 0x23c   :  { %v2373_v13 = vpop.f32.mrb[79].mxu0  ;;  %4608 = vmatpush1.bf16.msra.mxu0 %v4607_v18  ;;  %v2372_v37 = vadd.f32 %v2371_v38, %v6525_v36  ;;  %v3265_v62 = vmax.f32 %v2479_v57, 0.0  ;;  %p4739_p3 = por %p4738_p2, %p4737_p1 }
 0x23d   :  { %v2484_v9 = vpop.f32.mrb[78].mxu1  ;;  %4622 = vmatprep.subr.bf16.mxu1 %v4621_v54  ;;  %v2374_v56 = vadd.f32 %v2373_v13, %v6525_v36  ;;  %v3266_v43 = vmax.f32 %v2481_v19, 0.0 }
 0x23e   :  { %v2486_v35 = vpop.f32.mrb[79].mxu1  ;;  %4624 = vmatpush1.bf16.msra.mxu1 %v4623_v28  ;;  %v2485_v6 = vadd.f32 %v2484_v9, %v6525_v36  ;;  %v3279_v41 = vmax.f32 %v2372_v37, 0.0  ;;  %p4740_p4 = pnand %p4739_p3, %p4733_p0 }
 0x23f   :  { %v2487_v11 = vadd.f32 %v2486_v35, %v6525_v36  ;;  %v3280_v61 = vmax.f32 %v2374_v56, 0.0  ;;  %v2555_v2 = vpop.f32.mrb[80].mxu0 }
 0x240   :  { %v3281_v21 = vmax.f32 %v2485_v6, 0.0  ;;  %v2557_v1 = vpop.f32.mrb[81].mxu0  ;;  %v4611_v4 = vpack.c.bf16 %v3279_v41, %v3263_v42  ;;  %v2556_v58 = vadd.f32 %v2555_v2, %v6487_v33 }
 0x241   :  { %v3282_v23 = vmax.f32 %v2487_v11, 0.0  ;;  %v2668_v24 = vpop.f32.mrb[80].mxu1  ;;  %v4609_v5 = vpack.c.bf16 %v3280_v61, %v3264_v59  ;;  %v2558_v44 = vadd.f32 %v2557_v1, %v6487_v33 }
 0x242   :  { %v2670_v15 = vpop.f32.mrb[81].mxu1  ;;  %v4627_v47 = vpack.c.bf16 %v3281_v21, %v3265_v62  ;;  %v2669_v49 = vadd.f32 %v2668_v24, %v6487_v33  ;;  %v3171_v14 = vmax.f32 %v2556_v58, 0.0 }
 0x243   :  { %v4625_v52 = vpack.c.bf16 %v3282_v23, %v3266_v43  ;;  %v2561_v12 = vpop.f32.mrb[82].mxu0  ;;  %4610 = vmatprep.subr.bf16.mxu0 %v4609_v5  ;;  %v2671_v45 = vadd.f32 %v2670_v15, %v6487_v33  ;;  %v3172_v51 = vmax.f32 %v2558_v44, 0.0 }
 0x244   :  { %v2562_v20 = vadd.f32 %v2561_v12, %v6489_v55  ;;  %v2563_v46 = vpop.f32.mrb[83].mxu0  ;;  %4612 = vmatpush1.bf16.msra.mxu0 %v4611_v4  ;;  %v3173_v50 = vmax.f32 %v2669_v49, 0.0 }
 0x245   :  { %v2674_v22 = vpop.f32.mrb[82].mxu1  ;;  %4626 = vmatprep.subr.bf16.mxu1 %v4625_v52  ;;  %v2564_v16 = vadd.f32 %v2563_v46, %v6489_v55  ;;  %v3174_v17 = vmax.f32 %v2671_v45, 0.0 }
 0x246   :  { %v2675_v29 = vadd.f32 %v2674_v22, %v6489_v55  ;;  %v2676_v7 = vpop.f32.mrb[83].mxu1  ;;  %4628 = vmatpush1.bf16.msra.mxu1 %v4627_v47  ;;  %v3187_v48 = vmax.f32 %v2562_v20, 0.0 }
 0x247   :  { %v2677_v8 = vadd.f32 %v2676_v7, %v6489_v55  ;;  %v3188_v63 = vmax.f32 %v2564_v16, 0.0  ;;  %4397 = vmatmul.mubr.msk.f32.vlgmr.msra.gmra.mrb[128].mxu0 %vm3306_vm10, %v6543_v27  ;;  %v2567_v31 = vpop.f32.mrb[84].mxu0 }
 0x248   :  { %v3189_v10 = vmax.f32 %v2675_v29, 0.0  ;;  %v4631_v3 = vpack.c.bf16 %v3187_v48, %v3171_v14  ;;  %v2569_v34 = vpop.f32.mrb[85].mxu0  ;;  %3516 = vmatprep.mubr.f32.mxu0 %v6909_v39  ;;  %v2568_v25 = vadd.f32 %v2567_v31, %v6494_v0 }
 0x249   :  { %v3190_v18 = vmax.f32 %v2677_v8, 0.0  ;;  %4398 = vmatmul.mubr.msk.f32.vlgmr.msra.gmra.mrb[128].mxu1 %vm3306_vm10, %v6543_v27  ;;  %v2680_v32 = vpop.f32.mrb[84].mxu1  ;;  %v4629_v54 = vpack.c.bf16 %v3188_v63, %v3172_v51  ;;  %v2570_v9 = vadd.f32 %v2569_v34, %v6494_v0 }
 0x24a   :  { %v4647_v28 = vpack.c.bf16 %v3189_v10, %v3173_v50  ;;  %v2682_v60 = vpop.f32.mrb[85].mxu1  ;;  %3587 = vmatprep.mubr.f32.mxu1 %v6909_v39  ;;  %v2681_v57 = vadd.f32 %v2680_v32, %v6494_v0  ;;  %v3203_v41 = vmax.f32 %v2568_v25, 0.0 }
 0x24b   :  { %v4645_v38 = vpack.c.bf16 %v3190_v18, %v3174_v17  ;;  %v2573_v13 = vpop.f32.mrb[86].mxu0  ;;  %4630 = vmatprep.subr.bf16.mxu0 %v4629_v54  ;;  %v2683_v19 = vadd.f32 %v2682_v60, %v6494_v0  ;;  %v3204_v62 = vmax.f32 %v2570_v9, 0.0 }
 0x24c   :  { %v2574_v37 = vadd.f32 %v2573_v13, %v6501_v53  ;;  %v2575_v35 = vpop.f32.mrb[87].mxu0  ;;  %4632 = vmatpush1.bf16.msra.mxu0 %v4631_v3  ;;  %v3205_v2 = vmax.f32 %v2681_v57, 0.0 }
 0x24d   :  { %v2686_v56 = vpop.f32.mrb[86].mxu1  ;;  %4646 = vmatprep.subr.bf16.mxu1 %v4645_v38  ;;  %v2576_v11 = vadd.f32 %v2575_v35, %v6501_v53  ;;  %v3206_v24 = vmax.f32 %v2683_v19, 0.0 }
 0x24e   :  { %v2687_v6 = vadd.f32 %v2686_v56, %v6501_v53  ;;  %v2688_v42 = vpop.f32.mrb[87].mxu1  ;;  %4648 = vmatpush1.bf16.msra.mxu1 %v4647_v28  ;;  %v3219_v59 = vmax.f32 %v2574_v37, 0.0 }
 0x24f   :  { %v2689_v61 = vadd.f32 %v2688_v42, %v6501_v53  ;;  %v3220_v43 = vmax.f32 %v2576_v11, 0.0  ;;  %v2579_v23 = vpop.f32.mrb[88].mxu0 }
 0x250   :  { %v3221_v21 = vmax.f32 %v2687_v6, 0.0  ;;  %v4635_v1 = vpack.c.bf16 %v3219_v59, %v3203_v41  ;;  %v2581_v15 = vpop.f32.mrb[89].mxu0  ;;  %v2580_v44 = vadd.f32 %v2579_v23, %v6511_v26 }
 0x251   :  { %v3222_v4 = vmax.f32 %v2689_v61, 0.0  ;;  %v2692_v5 = vpop.f32.mrb[88].mxu1  ;;  %v4633_v52 = vpack.c.bf16 %v3220_v43, %v3204_v62  ;;  %v2582_v45 = vadd.f32 %v2581_v15, %v6511_v26 }
 0x252   :  { %v4651_v47 = vpack.c.bf16 %v3221_v21, %v3205_v2  ;;  %v2694_v58 = vpop.f32.mrb[89].mxu1  ;;  %v2693_v12 = vadd.f32 %v2692_v5, %v6511_v26  ;;  %v3235_v8 = vmax.f32 %v2580_v44, 0.0 }
 0x253   :  { %v4649_v49 = vpack.c.bf16 %v3222_v4, %v3206_v24  ;;  %v2585_v20 = vpop.f32.mrb[90].mxu0  ;;  %4634 = vmatprep.subr.bf16.mxu0 %v4633_v52  ;;  %v2695_v22 = vadd.f32 %v2694_v58, %v6511_v26  ;;  %v3236_v63 = vmax.f32 %v2582_v45, 0.0 }
 0x254   :  { %v2586_v46 = vadd.f32 %v2585_v20, %v6513_v40  ;;  %v2587_v16 = vpop.f32.mrb[91].mxu0  ;;  %4636 = vmatpush1.bf16.msra.mxu0 %v4635_v1  ;;  %v3237_v10 = vmax.f32 %v2693_v12, 0.0 }
 0x255   :  { %v2698_v29 = vpop.f32.mrb[90].mxu1  ;;  %4650 = vmatprep.subr.bf16.mxu1 %v4649_v49  ;;  %v2588_v14 = vadd.f32 %v2587_v16, %v6513_v40  ;;  %v3238_v18 = vmax.f32 %v2695_v22, 0.0 }
 0x256   :  { %v2699_v7 = vadd.f32 %v2698_v29, %v6513_v40  ;;  %v2700_v48 = vpop.f32.mrb[91].mxu1  ;;  %4652 = vmatpush1.bf16.msra.mxu1 %v4651_v47  ;;  %v3251_v50 = vmax.f32 %v2586_v46, 0.0 }
 0x257   :  { %v2701_v51 = vadd.f32 %v2700_v48, %v6513_v40  ;;  %v3252_v17 = vmax.f32 %v2588_v14, 0.0  ;;  %v2591_v3 = vpop.f32.mrb[92].mxu0 }
 0x258   :  { %v3253_v31 = vmax.f32 %v2699_v7, 0.0  ;;  %v4639_v32 = vpack.c.bf16 %v3251_v50, %v3235_v8  ;;  %v2593_v54 = vpop.f32.mrb[93].mxu0  ;;  %v2592_v9 = vadd.f32 %v2591_v3, %v6523_v30 }
 0x259   :  { %v3254_v34 = vmax.f32 %v2701_v51, 0.0  ;;  %v2704_v28 = vpop.f32.mrb[92].mxu1  ;;  %v4637_v38 = vpack.c.bf16 %v3252_v17, %v3236_v63  ;;  %v2594_v19 = vadd.f32 %v2593_v54, %v6523_v30 }
 0x25a   :  { %v4655_v60 = vpack.c.bf16 %v3253_v31, %v3237_v10  ;;  %v2706_v25 = vpop.f32.mrb[93].mxu1  ;;  %v2705_v13 = vadd.f32 %v2704_v28, %v6523_v30  ;;  %v3267_v61 = vmax.f32 %v2592_v9, 0.0 }
 0x25b   :  { %v4653_v57 = vpack.c.bf16 %v3254_v34, %v3238_v18  ;;  %v2597_v37 = vpop.f32.mrb[94].mxu0  ;;  %4638 = vmatprep.subr.bf16.mxu0 %v4637_v38  ;;  %v2707_v56 = vadd.f32 %v2706_v25, %v6523_v30  ;;  %v3268_v43 = vmax.f32 %v2594_v19, 0.0 }
 0x25c   :  { %v2598_v35 = vadd.f32 %v2597_v37, %v6525_v36  ;;  %v2599_v11 = vpop.f32.mrb[95].mxu0  ;;  %4640 = vmatpush1.bf16.msra.mxu0 %v4639_v32  ;;  %v3269_v21 = vmax.f32 %v2705_v13, 0.0 }
 0x25d   :  { %v2710_v6 = vpop.f32.mrb[94].mxu1  ;;  %4654 = vmatprep.subr.bf16.mxu1 %v4653_v57  ;;  %v2600_v41 = vadd.f32 %v2599_v11, %v6525_v36  ;;  %v3270_v4 = vmax.f32 %v2707_v56, 0.0 }
 0x25e   :  { %v2711_v42 = vadd.f32 %v2710_v6, %v6525_v36  ;;  %v2712_v59 = vpop.f32.mrb[95].mxu1  ;;  %4656 = vmatpush1.bf16.msra.mxu1 %v4655_v60  ;;  %v3283_v2 = vmax.f32 %v2598_v35, 0.0 }
 0x25f   :  { %v2713_v62 = vadd.f32 %v2712_v59, %v6525_v36  ;;  %v3284_v24 = vmax.f32 %v2600_v41, 0.0  ;;  %v2781_v1 = vpop.f32.mrb[96].mxu0 }
 0x260   :  { %v3285_v23 = vmax.f32 %v2711_v42, 0.0  ;;  %v4643_v5 = vpack.c.bf16 %v3283_v2, %v3267_v61  ;;  %v2783_v52 = vpop.f32.mrb[97].mxu0  ;;  %v2782_v45 = vadd.f32 %v2781_v1, %v6487_v33 }
 0x261   :  { %v3286_v15 = vmax.f32 %v2713_v62, 0.0  ;;  %v2894_v47 = vpop.f32.mrb[96].mxu1  ;;  %v4641_v49 = vpack.c.bf16 %v3284_v24, %v3268_v43  ;;  %v2784_v22 = vadd.f32 %v2783_v52, %v6487_v33 }
 0x262   :  { %v4659_v58 = vpack.c.bf16 %v3285_v23, %v3269_v21  ;;  %v2896_v44 = vpop.f32.mrb[97].mxu1  ;;  %v2895_v20 = vadd.f32 %v2894_v47, %v6487_v33  ;;  %v3175_v51 = vmax.f32 %v2782_v45, 0.0 }
 0x263   :  { %v4657_v12 = vpack.c.bf16 %v3286_v15, %v3270_v4  ;;  %v2787_v46 = vpop.f32.mrb[98].mxu0  ;;  %4642 = vmatprep.subr.bf16.mxu0 %v4641_v49  ;;  %v2897_v29 = vadd.f32 %v2896_v44, %v6487_v33  ;;  %v3176_v17 = vmax.f32 %v2784_v22, 0.0 }
 0x264   :  { %v2788_v16 = vadd.f32 %v2787_v46, %v6489_v55  ;;  %v2789_v14 = vpop.f32.mrb[99].mxu0  ;;  %4644 = vmatpush1.bf16.msra.mxu0 %v4643_v5  ;;  %v3177_v31 = vmax.f32 %v2895_v20, 0.0 }
 0x265   :  { %v2900_v7 = vpop.f32.mrb[98].mxu1  ;;  %4658 = vmatprep.subr.bf16.mxu1 %v4657_v12  ;;  %v2790_v8 = vadd.f32 %v2789_v14, %v6489_v55  ;;  %v3178_v34 = vmax.f32 %v2897_v29, 0.0 }
 0x266   :  { %v2901_v48 = vadd.f32 %v2900_v7, %v6489_v55  ;;  %v2902_v50 = vpop.f32.mrb[99].mxu1  ;;  %4660 = vmatpush1.bf16.msra.mxu1 %v4659_v58  ;;  %v3191_v10 = vmax.f32 %v2788_v16, 0.0 }
 0x267   :  { %v2903_v63 = vadd.f32 %v2902_v50, %v6489_v55  ;;  %v3192_v18 = vmax.f32 %v2790_v8, 0.0  ;;  %v2793_v32 = vpop.f32.mrb[100].mxu0  ;;  %4399 = vmatmul.mubr.msk.f32.vlgmr.msra.gmra.mrb[130].mxu0 %vm3306_vm10, %v6543_v27 }
 0x268   :  { %v3193_v3 = vmax.f32 %v2901_v48, 0.0  ;;  %v4663_v28 = vpack.c.bf16 %v3191_v10, %v3175_v51  ;;  %v2795_v38 = vpop.f32.mrb[101].mxu0  ;;  %3658 = vmatprep.mubr.f32.mxu0 %v6909_v39  ;;  %v2794_v19 = vadd.f32 %v2793_v32, %v6494_v0 }
 0x269   :  { %v3194_v54 = vmax.f32 %v2903_v63, 0.0  ;;  %v2906_v60 = vpop.f32.mrb[100].mxu1  ;;  %4400 = vmatmul.mubr.msk.f32.vlgmr.msra.gmra.mrb[130].mxu1 %vm3306_vm10, %v6543_v27  ;;  %v4661_v57 = vpack.c.bf16 %v3192_v18, %v3176_v17  ;;  %v2796_v56 = vadd.f32 %v2795_v38, %v6494_v0 }
 0x26a   :  { %v4679_v25 = vpack.c.bf16 %v3193_v3, %v3177_v31  ;;  %v2908_v9 = vpop.f32.mrb[101].mxu1  ;;  %3729 = vmatprep.mubr.f32.mxu1 %v6909_v39  ;;  %v2907_v37 = vadd.f32 %v2906_v60, %v6494_v0  ;;  %v3207_v62 = vmax.f32 %v2794_v19, 0.0 }
 0x26b   :  { %v4677_v13 = vpack.c.bf16 %v3194_v54, %v3178_v34  ;;  %v2799_v35 = vpop.f32.mrb[102].mxu0  ;;  %4662 = vmatprep.subr.bf16.mxu0 %v4661_v57  ;;  %v2909_v6 = vadd.f32 %v2908_v9, %v6494_v0  ;;  %v3208_v24 = vmax.f32 %v2796_v56, 0.0 }
 0x26c   :  { %v2800_v11 = vadd.f32 %v2799_v35, %v6501_v53  ;;  %v2801_v41 = vpop.f32.mrb[103].mxu0  ;;  %4664 = vmatpush1.bf16.msra.mxu0 %v4663_v28  ;;  %v3209_v23 = vmax.f32 %v2907_v37, 0.0 }
 0x26d   :  { %v2912_v42 = vpop.f32.mrb[102].mxu1  ;;  %4678 = vmatprep.subr.bf16.mxu1 %v4677_v13  ;;  %v2802_v61 = vadd.f32 %v2801_v41, %v6501_v53  ;;  %v3210_v15 = vmax.f32 %v2909_v6, 0.0 }
 0x26e   :  { %v2913_v59 = vadd.f32 %v2912_v42, %v6501_v53  ;;  %v2914_v2 = vpop.f32.mrb[103].mxu1  ;;  %4680 = vmatpush1.bf16.msra.mxu1 %v4679_v25  ;;  %v3223_v21 = vmax.f32 %v2800_v11, 0.0 }
 0x26f   :  { %v2915_v43 = vadd.f32 %v2914_v2, %v6501_v53  ;;  %v3224_v4 = vmax.f32 %v2802_v61, 0.0  ;;  %v2805_v5 = vpop.f32.mrb[104].mxu0 }
 0x270   :  { %v3225_v1 = vmax.f32 %v2913_v59, 0.0  ;;  %v4667_v47 = vpack.c.bf16 %v3223_v21, %v3207_v62  ;;  %v2807_v49 = vpop.f32.mrb[105].mxu0  ;;  %v2806_v22 = vadd.f32 %v2805_v5, %v6511_v26 }
 0x271   :  { %v3226_v52 = vmax.f32 %v2915_v43, 0.0  ;;  %v2918_v58 = vpop.f32.mrb[104].mxu1  ;;  %v4665_v12 = vpack.c.bf16 %v3224_v4, %v3208_v24  ;;  %v2808_v29 = vadd.f32 %v2807_v49, %v6511_v26 }
 0x272   :  { %v4683_v44 = vpack.c.bf16 %v3225_v1, %v3209_v23  ;;  %v2920_v45 = vpop.f32.mrb[105].mxu1  ;;  %v2919_v46 = vadd.f32 %v2918_v58, %v6511_v26  ;;  %v3239_v63 = vmax.f32 %v2806_v22, 0.0 }
 0x273   :  { %v4681_v20 = vpack.c.bf16 %v3226_v52, %v3210_v15  ;;  %v2811_v16 = vpop.f32.mrb[106].mxu0  ;;  %4666 = vmatprep.subr.bf16.mxu0 %v4665_v12  ;;  %v2921_v7 = vadd.f32 %v2920_v45, %v6511_v26  ;;  %v3240_v18 = vmax.f32 %v2808_v29, 0.0 }
 0x274   :  { %v2812_v14 = vadd.f32 %v2811_v16, %v6513_v40  ;;  %v2813_v8 = vpop.f32.mrb[107].mxu0  ;;  %4668 = vmatpush1.bf16.msra.mxu0 %v4667_v47  ;;  %v3241_v3 = vmax.f32 %v2919_v46, 0.0 }
 0x275   :  { %v2924_v48 = vpop.f32.mrb[106].mxu1  ;;  %4682 = vmatprep.subr.bf16.mxu1 %v4681_v20  ;;  %v2814_v51 = vadd.f32 %v2813_v8, %v6513_v40  ;;  %v3242_v54 = vmax.f32 %v2921_v7, 0.0 }
 0x276   :  { %v2925_v50 = vadd.f32 %v2924_v48, %v6513_v40  ;;  %v2926_v10 = vpop.f32.mrb[107].mxu1  ;;  %4684 = vmatpush1.bf16.msra.mxu1 %v4683_v44  ;;  %v3255_v31 = vmax.f32 %v2812_v14, 0.0 }
 0x277   :  { %v2927_v17 = vadd.f32 %v2926_v10, %v6513_v40  ;;  %v3256_v34 = vmax.f32 %v2814_v51, 0.0  ;;  %v2817_v28 = vpop.f32.mrb[108].mxu0 }
 0x278   :  { %v3257_v32 = vmax.f32 %v2925_v50, 0.0  ;;  %v4671_v60 = vpack.c.bf16 %v3255_v31, %v3239_v63  ;;  %v2819_v57 = vpop.f32.mrb[109].mxu0  ;;  %v2818_v56 = vadd.f32 %v2817_v28, %v6523_v30 }
 0x279   :  { %v3258_v38 = vmax.f32 %v2927_v17, 0.0  ;;  %v2930_v25 = vpop.f32.mrb[108].mxu1  ;;  %v4669_v13 = vpack.c.bf16 %v3256_v34, %v3240_v18  ;;  %v2820_v6 = vadd.f32 %v2819_v57, %v6523_v30 }
 0x27a   :  { %v4687_v9 = vpack.c.bf16 %v3257_v32, %v3241_v3  ;;  %v2932_v19 = vpop.f32.mrb[109].mxu1  ;;  %v2931_v35 = vadd.f32 %v2930_v25, %v6523_v30  ;;  %v3271_v43 = vmax.f32 %v2818_v56, 0.0 }
 0x27b   :  { %v4685_v37 = vpack.c.bf16 %v3258_v38, %v3242_v54  ;;  %v2823_v11 = vpop.f32.mrb[110].mxu0  ;;  %4670 = vmatprep.subr.bf16.mxu0 %v4669_v13  ;;  %v2933_v42 = vadd.f32 %v2932_v19, %v6523_v30  ;;  %v3272_v4 = vmax.f32 %v2820_v6, 0.0 }
 0x27c   :  { %v2824_v41 = vadd.f32 %v2823_v11, %v6525_v36  ;;  %v2825_v61 = vpop.f32.mrb[111].mxu0  ;;  %4672 = vmatpush1.bf16.msra.mxu0 %v4671_v60  ;;  %v3273_v1 = vmax.f32 %v2931_v35, 0.0 }
 0x27d   :  { %v2936_v59 = vpop.f32.mrb[110].mxu1  ;;  %4686 = vmatprep.subr.bf16.mxu1 %v4685_v37  ;;  %v2826_v62 = vadd.f32 %v2825_v61, %v6525_v36  ;;  %v3274_v52 = vmax.f32 %v2933_v42, 0.0 }
 0x27e   :  { %v2937_v2 = vadd.f32 %v2936_v59, %v6525_v36  ;;  %v2938_v21 = vpop.f32.mrb[111].mxu1  ;;  %4688 = vmatpush1.bf16.msra.mxu1 %v4687_v9  ;;  %v3287_v23 = vmax.f32 %v2824_v41, 0.0 }
 0x27f   :  { %v2939_v24 = vadd.f32 %v2938_v21, %v6525_v36  ;;  %v3288_v15 = vmax.f32 %v2826_v62, 0.0  ;;  %v3007_v47 = vpop.f32.mrb[112].mxu0 }
 0x280   :  { %v3289_v5 = vmax.f32 %v2937_v2, 0.0  ;;  %v4675_v58 = vpack.c.bf16 %v3287_v23, %v3271_v43  ;;  %v3009_v12 = vpop.f32.mrb[113].mxu0  ;;  %v3008_v29 = vadd.f32 %v3007_v47, %v6487_v33 }
 0x281   :  { %v3290_v49 = vmax.f32 %v2939_v24, 0.0  ;;  %v3120_v44 = vpop.f32.mrb[112].mxu1  ;;  %v4673_v20 = vpack.c.bf16 %v3288_v15, %v3272_v4  ;;  %v3010_v7 = vadd.f32 %v3009_v12, %v6487_v33 }
 0x282   :  { %v4691_v45 = vpack.c.bf16 %v3289_v5, %v3273_v1  ;;  %v3122_v22 = vpop.f32.mrb[113].mxu1  ;;  %v3121_v16 = vadd.f32 %v3120_v44, %v6487_v33  ;;  %v3179_v17 = vmax.f32 %v3008_v29, 0.0 }
 0x283   :  { %v4689_v46 = vpack.c.bf16 %v3290_v49, %v3274_v52  ;;  %v3013_v14 = vpop.f32.mrb[114].mxu0  ;;  %4674 = vmatprep.subr.bf16.mxu0 %v4673_v20  ;;  %v3123_v48 = vadd.f32 %v3122_v22, %v6487_v33  ;;  %v3180_v34 = vmax.f32 %v3010_v7, 0.0 }
 0x284   :  { %v3014_v8 = vadd.f32 %v3013_v14, %v6489_v55  ;;  %v3015_v51 = vpop.f32.mrb[115].mxu0  ;;  %4676 = vmatpush1.bf16.msra.mxu0 %v4675_v58  ;;  %v3181_v32 = vmax.f32 %v3121_v16, 0.0 }
 0x285   :  { %v3126_v50 = vpop.f32.mrb[114].mxu1  ;;  %4690 = vmatprep.subr.bf16.mxu1 %v4689_v46  ;;  %v3016_v63 = vadd.f32 %v3015_v51, %v6489_v55  ;;  %v3182_v60 = vmax.f32 %v3123_v48, 0.0 }
 0x286   :  { %v3127_v10 = vadd.f32 %v3126_v50, %v6489_v55  ;;  %v3128_v31 = vpop.f32.mrb[115].mxu1  ;;  %4692 = vmatpush1.bf16.msra.mxu1 %v4691_v45  ;;  %v3195_v3 = vmax.f32 %v3014_v8, 0.0 }
 0x287   :  { %v3129_v18 = vadd.f32 %v3128_v31, %v6489_v55  ;;  %v3196_v33 = vmax.f32 %v3016_v63, 0.0  ;;  %v3019_v54 = vpop.f32.mrb[116].mxu0  ;;  %4401 = vmatmul.mubr.msk.f32.vlgmr.msra.gmra.mrb[132].mxu0 %vm3306_vm10, %v6543_v27 }
 0x288   :  { %v3197_v28 = vmax.f32 %v3127_v10, 0.0  ;;  %v4695_v38 = vpack.c.bf16 %v3195_v3, %v3179_v17  ;;  %v3021_v9 = vpop.f32.mrb[117].mxu0  ;;  %3800 = vmatprep.mubr.f32.mxu0 %v6909_v39  ;;  %v3020_v56 = vadd.f32 %v3019_v54, %v6494_v0 }
 0x289   :  { %v3198_v25 = vmax.f32 %v3129_v18, 0.0  ;;  %v3132_v57 = vpop.f32.mrb[116].mxu1  ;;  %4402 = vmatmul.mubr.msk.f32.vlgmr.msra.gmra.mrb[132].mxu1 %vm3306_vm10, %v6543_v27  ;;  %v4693_v55 = vpack.c.bf16 %v3196_v33, %v3180_v34  ;;  %v3022_v6 = vadd.f32 %v3021_v9, %v6494_v0 }
 0x28a   :  { %v4711_v13 = vpack.c.bf16 %v3197_v28, %v3181_v32  ;;  %v3134_v19 = vpop.f32.mrb[117].mxu1  ;;  %3871 = vmatprep.mubr.f32.mxu1 %v6909_v39  ;;  %v3133_v35 = vadd.f32 %v3132_v57, %v6494_v0  ;;  %v3211_v21 = vmax.f32 %v3020_v56, 0.0 }
 0x28b   :  { %v4709_v37 = vpack.c.bf16 %v3198_v25, %v3182_v60  ;;  %v3025_v11 = vpop.f32.mrb[118].mxu0  ;;  %4694 = vmatprep.subr.bf16.mxu0 %v4693_v55  ;;  %v3135_v42 = vadd.f32 %v3134_v19, %v6494_v0  ;;  %v3212_v1 = vmax.f32 %v3022_v6, 0.0 }
 0x28c   :  { %v3026_v41 = vadd.f32 %v3025_v11, %v6501_v53  ;;  %v3027_v61 = vpop.f32.mrb[119].mxu0  ;;  %4696 = vmatpush1.bf16.msra.mxu0 %v4695_v38  ;;  %v3213_v24 = vmax.f32 %v3133_v35, 0.0 }
 0x28d   :  { %v3138_v59 = vpop.f32.mrb[118].mxu1  ;;  %4710 = vmatprep.subr.bf16.mxu1 %v4709_v37  ;;  %v3028_v39 = vadd.f32 %v3027_v61, %v6501_v53  ;;  %v3214_v15 = vmax.f32 %v3135_v42, 0.0 }
 0x28e   :  { %v3139_v2 = vadd.f32 %v3138_v59, %v6501_v53  ;;  %v3140_v62 = vpop.f32.mrb[119].mxu1  ;;  %4712 = vmatpush1.bf16.msra.mxu1 %v4711_v13  ;;  %v3227_v43 = vmax.f32 %v3026_v41, 0.0 }
 0x28f   :  { %v3141_v23 = vadd.f32 %v3140_v62, %v6501_v53  ;;  %v3228_v0 = vmax.f32 %v3028_v39, 0.0  ;;  %v3031_v5 = vpop.f32.mrb[120].mxu0 }
 0x290   :  { %v3229_v4 = vmax.f32 %v3139_v2, 0.0  ;;  %v4699_v47 = vpack.c.bf16 %v3227_v43, %v3211_v21  ;;  %v3033_v49 = vpop.f32.mrb[121].mxu0  ;;  %v3032_v22 = vadd.f32 %v3031_v5, %v6511_v26 }
 0x291   :  { %v3230_v52 = vmax.f32 %v3141_v23, 0.0  ;;  %v3144_v58 = vpop.f32.mrb[120].mxu1  ;;  %v4697_v12 = vpack.c.bf16 %v3228_v0, %v3212_v1  ;;  %v3034_v53 = vadd.f32 %v3033_v49, %v6511_v26 }
 0x292   :  { %v4715_v44 = vpack.c.bf16 %v3229_v4, %v3213_v24  ;;  %v3146_v45 = vpop.f32.mrb[121].mxu1  ;;  %v3145_v46 = vadd.f32 %v3144_v58, %v6511_v26  ;;  %v3243_v10 = vmax.f32 %v3032_v22, 0.0 }
 0x293   :  { %v4713_v20 = vpack.c.bf16 %v3230_v52, %v3214_v15  ;;  %v3037_v29 = vpop.f32.mrb[122].mxu0  ;;  %4698 = vmatprep.subr.bf16.mxu0 %v4697_v12  ;;  %v3147_v16 = vadd.f32 %v3146_v45, %v6511_v26  ;;  %v3244_v3 = vmax.f32 %v3034_v53, 0.0  ;;  %v3300_v15 = vpop.permute.xlu0 %3299  ;;  %v6983_v52 = vld [vmem:[#allocation7_spill] sm:$0xff] }
 0x294   :  { %v3038_v7 = vadd.f32 %v3037_v29, %v6513_v40  ;;  %v3039_v48 = vpop.f32.mrb[123].mxu0  ;;  %4700 = vmatpush1.bf16.msra.mxu0 %v4699_v47  ;;  %v3245_v17 = vmax.f32 %v3145_v46, 0.0  ;;  %v3305_v58 = vrot.slane %v3300_v15, %v6983_v52  ;;  %v6984_v46 = vld [vmem:[#allocation6_spill] sm:$0xff] }
 0x295   :  { %v3150_v14 = vpop.f32.mrb[122].mxu1  ;;  %4714 = vmatprep.subr.bf16.mxu1 %v4713_v20  ;;  %v3040_v50 = vadd.f32 %v3039_v48, %v6513_v40  ;;  %v3246_v34 = vmax.f32 %v3147_v16, 0.0 }
 0x296   :  { %v3151_v8 = vadd.f32 %v3150_v14, %v6513_v40  ;;  %v3152_v51 = vpop.f32.mrb[123].mxu1  ;;  %4716 = vmatpush1.bf16.msra.mxu1 %v4715_v44  ;;  %v3259_v63 = vmax.f32 %v3038_v7, 0.0 }
 0x297   :  { %v3153_v31 = vadd.f32 %v3152_v51, %v6513_v40  ;;  %v3260_v26 = vmax.f32 %v3040_v50, 0.0  ;;  %v3043_v32 = vpop.f32.mrb[124].mxu0 }
 0x298   :  { %v3261_v18 = vmax.f32 %v3151_v8, 0.0  ;;  %v4703_v28 = vpack.c.bf16 %v3259_v63, %v3243_v10  ;;  %v3045_v60 = vpop.f32.mrb[125].mxu0  ;;  %v3044_v13 = vadd.f32 %v3043_v32, %v6523_v30 }
 0x299   :  { %v3262_v33 = vmax.f32 %v3153_v31, 0.0  ;;  %v3156_v54 = vpop.f32.mrb[124].mxu1  ;;  %v4701_v25 = vpack.c.bf16 %v3260_v26, %v3244_v3  ;;  %v3046_v40 = vadd.f32 %v3045_v60, %v6523_v30 }
 0x29a   :  { %v4719_v38 = vpack.c.bf16 %v3261_v18, %v3245_v17  ;;  %v3158_v57 = vpop.f32.mrb[125].mxu1  ;;  %v3157_v55 = vadd.f32 %v3156_v54, %v6523_v30  ;;  %v3275_v59 = vmax.f32 %v3044_v13, 0.0 }
 0x29b   :  { %v4717_v9 = vpack.c.bf16 %v3262_v33, %v3246_v34  ;;  %v3049_v19 = vpop.f32.mrb[126].mxu0  ;;  %4702 = vmatprep.subr.bf16.mxu0 %v4701_v25  ;;  %v3159_v37 = vadd.f32 %v3158_v57, %v6523_v30  ;;  %v3276_v62 = vmax.f32 %v3046_v40, 0.0 }
 0x29c   :  { %v3050_v56 = vadd.f32 %v3049_v19, %v6525_v36  ;;  %v3051_v6 = vpop.f32.mrb[127].mxu0  ;;  %4704 = vmatpush1.bf16.msra.mxu0 %v4703_v28  ;;  %v3277_v39 = vmax.f32 %v3157_v55, 0.0 }
 0x29d   :  { %v3162_v35 = vpop.f32.mrb[126].mxu1  ;;  %4718 = vmatprep.subr.bf16.mxu1 %v4717_v9  ;;  %v3052_v42 = vadd.f32 %v3051_v6, %v6525_v36  ;;  %v3278_v43 = vmax.f32 %v3159_v37, 0.0 }
 0x29e   :  { %v3163_v11 = vadd.f32 %v3162_v35, %v6525_v36  ;;  %v3164_v41 = vpop.f32.mrb[127].mxu1  ;;  %4720 = vmatpush1.bf16.msra.mxu1 %v4719_v38  ;;  %v3291_v61 = vmax.f32 %v3050_v56, 0.0 }
 0x29f   :  { %v3165_v2 = vadd.f32 %v3164_v41, %v6525_v36  ;;  %v3292_v30 = vmax.f32 %v3052_v42, 0.0  ;;  %v4759_v36 = vmov 1966171168  }
 0x2a0   :  { %v3293_v21 = vmax.f32 %v3163_v11, 0.0  ;;  %v4707_v23 = vpack.c.bf16 %v3291_v61, %v3275_v59  ;;  %v3899_v5 = vunpack.c.l.s4 %v4759_v36 }
 0x2a1   :  { %v3294_v24 = vmax.f32 %v3165_v2, 0.0  ;;  %v4705_v4 = vpack.c.bf16 %v3292_v30, %v3276_v62 }
 0x2a2   :  { %v4723_v1 = vpack.c.bf16 %v3293_v21, %v3277_v39  ;;  %v3900_v47 = vunpack.c.0.s8 %v3899_v5 }
 0x2a3   :  { %v4721_v0 = vpack.c.bf16 %v3294_v24, %v3278_v43  ;;  %4706 = vmatprep.subr.bf16.mxu0 %v4705_v4 }
 0x2a4   :  { %4708 = vmatpush1.bf16.msra.mxu0 %v4707_v23  ;;  %v3903_v53 = vsub.s32 %v3900_v47, %v6984_v46 }
 0x2a5   :  { %4722 = vmatprep.subr.bf16.mxu1 %v4721_v0 }
 0x2a6   :  { %4724 = vmatpush1.bf16.msra.mxu1 %v4723_v1 }
 0x2a7   :  { %4403 = vmatmul.mubr.msk.f32.vlgmr.msra.gmra.mrb[134].mxu0 %vm3306_vm10, %v6543_v27 }
 0x2a9   :  { %4404 = vmatmul.mubr.msk.f32.vlgmr.msra.gmra.mrb[134].mxu1 %vm3306_vm10, %v6543_v27 }
 0x31a   :  { %v3376_v49 = vpop.f32.mrb[128].mxu0 }
 0x31b   :  { %v3377_v44 = vadd.f32 %v3376_v49, %v3305_v58  ;;  %v3378_v45 = vpop.f32.mrb[129].mxu0 }
 0x31c   :  { %v3447_v12 = vpop.f32.mrb[128].mxu1  ;;  %v3379_v22 = vadd.f32 %v3378_v45, %v3305_v58 }
 0x31d   :  { %v3448_v20 = vadd.f32 %v3447_v12, %v3305_v58  ;;  %v3449_v29 = vpop.f32.mrb[129].mxu1 }
 0x31e   :  { %v3450_v16 = vadd.f32 %v3449_v29, %v3305_v58  ;;  %v3894_v7 = vcombine.low %v3377_v44, %v3379_v22 }
 0x320   :  { %v3895_v14 = vcombine.low %v3448_v20, %v3450_v16  ;;  %v3904_v48 = vrot.slane %v3894_v7, %v3903_v53 }
 0x322   :  { %v3911_v27 = vrot.slane %v3895_v14, %v3903_v53 }
 0x324   :  { %v3926_v8 = vcombine.low %v3904_v48, %v3911_v27 }
 0x326   :  { %v3934_v54 = vrot.slane %v3926_v8, %v3903_v53 }
 0x33a   :  { %v3518_v50 = vpop.f32.mrb[130].mxu0 }
 0x33b   :  { %v3519_v51 = vadd.f32 %v3518_v50, %v3305_v58  ;;  %v3520_v63 = vpop.f32.mrb[131].mxu0 }
 0x33c   :  { %v3589_v10 = vpop.f32.mrb[130].mxu1  ;;  %v3521_v17 = vadd.f32 %v3520_v63, %v3305_v58 }
 0x33d   :  { %v3590_v31 = vadd.f32 %v3589_v10, %v3305_v58  ;;  %v3591_v3 = vpop.f32.mrb[131].mxu1 }
 0x33e   :  { %v3592_v18 = vadd.f32 %v3591_v3, %v3305_v58  ;;  %v3896_v26 = vcombine.low %v3519_v51, %v3521_v17 }
 0x340   :  { %v3897_v32 = vcombine.low %v3590_v31, %v3592_v18  ;;  %v3918_v34 = vrot.slane %v3896_v26, %v3903_v53 }
 0x342   :  { %v3925_v28 = vrot.slane %v3897_v32, %v3903_v53 }
 0x344   :  { %v3927_v33 = vcombine.low %v3918_v34, %v3925_v28 }
 0x346   :  { %v3941_v60 = vrot.slane %v3927_v33, %v3903_v53 }
 0x348   :  { %v3942_v38 = vcombine.low %v3934_v54, %v3941_v60 }
 0x34a   :  { %3994 = vst [vmem:[#allocation3] sm:$0xff] %v3942_v38 }
 0x35a   :  { %v3660_v25 = vpop.f32.mrb[132].mxu0 }
 0x35b   :  { %v3661_v57 = vadd.f32 %v3660_v25, %v3305_v58  ;;  %v3662_v13 = vpop.f32.mrb[133].mxu0 }
 0x35c   :  { %v3731_v9 = vpop.f32.mrb[132].mxu1  ;;  %v3663_v40 = vadd.f32 %v3662_v13, %v3305_v58 }
 0x35d   :  { %v3732_v55 = vadd.f32 %v3731_v9, %v3305_v58  ;;  %v3733_v19 = vpop.f32.mrb[133].mxu1 }
 0x35e   :  { %v3734_v37 = vadd.f32 %v3733_v19, %v3305_v58  ;;  %v3943_v56 = vcombine.low %v3661_v57, %v3663_v40 }
 0x360   :  { %v3944_v35 = vcombine.low %v3732_v55, %v3734_v37  ;;  %v3953_v6 = vrot.slane %v3943_v56, %v3903_v53 }
 0x362   :  { %v3960_v11 = vrot.slane %v3944_v35, %v3903_v53 }
 0x364   :  { %v3975_v42 = vcombine.low %v3953_v6, %v3960_v11 }
 0x366   :  { %v3983_v0 = vrot.slane %v3975_v42, %v3903_v53 }
 0x37a   :  { %v3802_v41 = vpop.f32.mrb[134].mxu0 }
 0x37b   :  { %v3803_v59 = vadd.f32 %v3802_v41, %v3305_v58  ;;  %v3804_v2 = vpop.f32.mrb[135].mxu0 }
 0x37c   :  { %v3873_v61 = vpop.f32.mrb[134].mxu1  ;;  %v3805_v62 = vadd.f32 %v3804_v2, %v3305_v58 }
 0x37d   :  { %v3874_v39 = vadd.f32 %v3873_v61, %v3305_v58  ;;  %v3875_v21 = vpop.f32.mrb[135].mxu1 }
 0x37e   :  { %v3876_v30 = vadd.f32 %v3875_v21, %v3305_v58  ;;  %v3945_v43 = vcombine.low %v3803_v59, %v3805_v62 }
 0x380   :  { %v3946_v23 = vcombine.low %v3874_v39, %v3876_v30  ;;  %v3967_v24 = vrot.slane %v3945_v43, %v3903_v53 }
 0x382   :  { %v3974_v1 = vrot.slane %v3946_v23, %v3903_v53 }
 0x384   :  { %v3976_v4 = vcombine.low %v3967_v24, %v3974_v1 }
 0x386   :  { %v3990_v36 = vrot.slane %v3976_v4, %v3903_v53 }
 0x388   :  { %v3991_v5 = vcombine.low %v3983_v0, %v3990_v36 }
 0x38a   :  { %3995 = vst [vmem:[#allocation3 + $0x8] sm:$0xff] %v3991_v5 }
 0x38b   :  { %4743 = shalt.err (!%p4740_p4)
}
 0x38c   :  { %s4744_s21 = scalar_lea.hbm %s6678_s6, 256 }
 0x38d   :  { %p4745_p5 = scmp.ne.s32.totalorder %s6678_s6, %s4744_s21  ;;  %p4748_p6 = scmp.lt.u32.totalorder %s4744_s21, %s6678_s6 }
 0x38f   :  { %p4750_p7 = pnand %p4748_p6, %p4745_p5 }
 0x391   :  { %4753 = shalt.err (!%p4750_p7)
}
 0x392   :  { %4005 = dma.vmem_to_hbm [thread:$0]  %s4003_s17, 256, %s6678_s6, [#allocation4]  }
 0x393   :  { %4754 = dma.done.wait [#allocation4], 256  }
 0x394   :  { %4755 = vsyncadd [#allocation4], 4294967040 }
 0x395   :  { %4009 = vsyncpa [#allocation4], 1 }

</bundles_post_ra>
